<compile_context>
chip_gen: v6e
topology: v6e:2x2x1
jax: 0.10.0
libtpu: 0.0.40
codegen_flags: <defaults>
</compile_context>

<pallas_src>
import jax
import jax.numpy as jnp
from jax.experimental import pallas as pl
from jax.experimental.pallas import tpu as pltpu

DT = 0.05
G = 9.81
K1 = 0.1
K2 = 0.1
SCALE = (4.0, 2.0)          # design transform scale (python floats -> folded)
SHIFT = (0.0, 0.0)          # design transform shift
DIFFUSION = (0.0, 0.0, 0.1, 0.1)

SUB = 8                     # sublanes per vreg tile
LANE = 128                  # lanes per vreg tile
BLOCK = SUB * LANE          # batch samples per grid batch-block (full tile)


def _rollout_kernel(log_theta_ref, w1b_ref, b1b_ref, w2b_ref, b2b_ref,
                    noise_ref, out_ref, state_ref, inv_ref):
    """One rollout step.  grid = (batch_blocks [parallel], T [arbitrary])."""
    t = pl.program_id(1)

    # ---- per-batch-block init: state + theta-derived loop invariants -------
    # Cached in VMEM scratch so exp() and the theta algebra run once per block.
    @pl.when(t == 0)
    def _init():
        theta = jnp.exp(log_theta_ref[...])           # [4, 8, 128]
        m1, m2, l1, l2 = theta[0], theta[1], theta[2], theta[3]
        I_1 = m1 * l1 * l1
        I_2 = m2 * l2 * l2
        inv_ref[0] = I_1 + I_2 + m2 * l1 * l1         # M_1 = this + 2*m2l1l2*c2
        inv_ref[1] = I_2                              # == M_4; M_2 = I_2 + m2l1l2*c2
        inv_ref[2] = m2 * l1 * l2                     # m2*l1*l2
        inv_ref[3] = -G * (m1 + m2) * l1              # tau_1 coeff of sin(q1)
        inv_ref[4] = -G * m2 * l2                     # tau coeff of sin(q1+q2)
        state_ref[...] = jnp.zeros_like(state_ref)    # module's init_state = 0

    q1 = state_ref[0]                                 # each a full [8, 128] vreg
    q2 = state_ref[1]
    dq1 = state_ref[2]
    dq2 = state_ref[3]

    # ---- design network (2-layer MLP on current outcome), on the VPU -------
    # Weights arrive pre-broadcast to (8,128) tiles; the only per-step
    # broadcasts are leading-axis state broadcasts (vreg reuse, free).
    h = (w1b_ref[0] * q1[None] + w1b_ref[1] * q2[None]
         + w1b_ref[2] * dq1[None] + w1b_ref[3] * dq2[None]) + b1b_ref[...]
    h = jnp.maximum(h, 0.0)                           # [H, 8, 128]
    xi0 = jnp.sum(w2b_ref[0] * h, axis=0) + b2b_ref[0]   # leading-axis reduce
    xi1 = jnp.sum(w2b_ref[1] * h, axis=0) + b2b_ref[1]   # (pure VPU adds)

    # design transform: shift + scale * tanh(xi_untransformed)
    u1 = SHIFT[0] + SCALE[0] * jnp.tanh(xi0)
    u2 = SHIFT[1] + SCALE[1] * jnp.tanh(xi1)

    # ---- double-pendulum ODE (every op on a full (8,128) vreg) -------------
    A = inv_ref[0]
    I_2 = inv_ref[1]
    m2l1l2 = inv_ref[2]
    gl1m12 = inv_ref[3]
    gm2l2 = inv_ref[4]

    s1 = jnp.sin(q1)
    s2 = jnp.sin(q2)
    c2 = jnp.cos(q2)
    s12 = jnp.sin(q1 + q2)

    M_1 = A + 2.0 * m2l1l2 * c2
    M_2 = I_2 + m2l1l2 * c2
    M_3 = M_2
    M_4 = I_2

    C_2 = -m2l1l2 * (2.0 * dq1 + dq2) * s2
    C_3 = 0.5 * m2l1l2 * (2.0 * dq1 + dq2) * s2
    C_4 = -0.5 * m2l1l2 * dq1 * s2

    tau_1 = gl1m12 * s1 + gm2l2 * s12
    tau_2 = gm2l2 * s12

    uu1 = u1 - K1 * dq1
    uu2 = u2 - K2 * dq2

    # divides -> EUP approx reciprocal + one Newton-Raphson refinement each.
    # (Inertia-matrix denominators are strictly positive & well-conditioned;
    #  padded lanes carry theta = exp(0) = 1 so they are positive there too.)
    inv_M1 = pl.reciprocal(M_1, approx=True)
    inv_M1 = inv_M1 * (2.0 - M_1 * inv_M1)
    rhs1 = tau_1 + uu1 - C_2 * dq2                    # (C_1 == 0 in reference)
    den = M_4 - M_3 * M_2 * inv_M1
    inv_den = pl.reciprocal(den, approx=True)
    inv_den = inv_den * (2.0 - den * inv_den)
    ddq2 = (tau_2 + uu2 - C_3 * dq1 - C_4 * dq2 - M_3 * inv_M1 * rhs1) * inv_den
    ddq1 = (rhs1 - M_2 * ddq2) * inv_M1

    # ---- Euler step + pre-scaled Gaussian observation noise ----------------
    # Noise rows read as static ref slices (direct full-tile loads).
    q1n = q1 + DT * dq1 + noise_ref[0]
    q2n = q2 + DT * dq2 + noise_ref[1]
    dq1n = dq1 + DT * ddq1 + noise_ref[2]
    dq2n = dq2 + DT * ddq2 + noise_ref[3]

    state_ref[0] = q1n
    state_ref[1] = q2n
    state_ref[2] = dq1n
    state_ref[3] = dq2n

    # ---- combined output slab: 6 full-(8,128)-tile unmasked stores ---------
    out_ref[0] = xi0          # untransformed design (matches module.forward)
    out_ref[1] = xi1
    out_ref[2] = q1n
    out_ref[3] = q2n
    out_ref[4] = dq1n
    out_ref[5] = dq2n


def double_pendulum_forward(log_theta, w1, b1, w2, b2, noise):
    """Forward rollout of the DoublePendulum policy.

    Args:
      log_theta: [B, 4]   conditioned latent 'log_theta'.
      w1: [4, H], b1: [H], w2: [H, 2], b2: [2]   synthetic design-net params.
      noise: [T, B, 4]    pre-scaled observation noise (sqrt(diag(cov)) * N(0,1)).

    Returns:
      designs  [T, B, 2]  untransformed designs xi_t (as in module.forward)
      outcomes [T, B, 4]  observed states y_t
    """
    B = log_theta.shape[0]
    T = noise.shape[0]
    H = w1.shape[1]

    nb = (B + BLOCK - 1) // BLOCK       # batch blocks of 8*128 = 1024 samples
    BP = nb * BLOCK

    # --- lane+sublane dense batch layout: B -> (nb, 8, 128) -----------------
    # Padded samples carry theta = exp(0) = 1 and zero state/noise; the ODE
    # stays finite for them and they are sliced away below (do NOT replace the
    # zero padding with uninitialized memory).
    lt_p = jnp.zeros((BP, 4), jnp.float32).at[:B].set(
        jnp.asarray(log_theta, jnp.float32))
    lt = lt_p.reshape(nb, SUB, LANE, 4).transpose(0, 3, 1, 2)       # [nb,4,8,128]

    nz_p = jnp.zeros((T, BP, 4), jnp.float32).at[:, :B].set(
        jnp.asarray(noise, jnp.float32))
    nz = nz_p.reshape(T, nb, SUB, LANE, 4).transpose(1, 0, 4, 2, 3)  # [nb,T,4,8,128]

    # --- MLP params pre-broadcast to (8,128) tiles ---------------------------
    # One-time < 1 MiB transfer with a constant index_map (fetched once); this
    # removes every per-step lane/sublane weight broadcast from the kernel.
    w1f = jnp.asarray(w1, jnp.float32)                  # [4, H]
    b1f = jnp.asarray(b1, jnp.float32)                  # [H]
    w2f = jnp.asarray(w2, jnp.float32)                  # [H, 2]
    b2f = jnp.asarray(b2, jnp.float32)                  # [2]
    w1b = jnp.broadcast_to(w1f[:, :, None, None], (4, H, SUB, LANE))
    b1b = jnp.broadcast_to(b1f[:, None, None], (H, SUB, LANE))
    w2b = jnp.broadcast_to(w2f.T[:, :, None, None], (2, H, SUB, LANE))
    b2b = jnp.broadcast_to(b2f[:, None, None], (2, SUB, LANE))

    out = pl.pallas_call(
        _rollout_kernel,
        out_shape=jax.ShapeDtypeStruct((nb, T, 6, SUB, LANE), jnp.float32),
        grid_spec=pltpu.PrefetchScalarGridSpec(
            num_scalar_prefetch=0,
            grid=(nb, T),                      # batch blocks x time (t fastest)
            in_specs=[
                pl.BlockSpec((None, 4, SUB, LANE), lambda b, t: (b, 0, 0, 0)),
                pl.BlockSpec((4, H, SUB, LANE), lambda b, t: (0, 0, 0, 0)),
                pl.BlockSpec((H, SUB, LANE), lambda b, t: (0, 0, 0)),
                pl.BlockSpec((2, H, SUB, LANE), lambda b, t: (0, 0, 0, 0)),
                pl.BlockSpec((2, SUB, LANE), lambda b, t: (0, 0, 0)),
                pl.BlockSpec((None, None, 4, SUB, LANE),
                             lambda b, t: (b, t, 0, 0, 0)),
            ],
            out_specs=pl.BlockSpec((None, None, 6, SUB, LANE),
                                   lambda b, t: (b, t, 0, 0, 0)),
            scratch_shapes=[
                pltpu.VMEM((4, SUB, LANE), jnp.float32),   # carried state
                pltpu.VMEM((5, SUB, LANE), jnp.float32),   # theta invariants
            ],
        ),
        # Streaming T on the grid keeps the VMEM working set at a few MiB on
        # every generation (well under v7x's 32 MiB scoped / 64 MiB physical),
        # so no vmem_limit override is needed.  The parallel batch axis lets
        # v7x's two TensorCores split blocks; the carried state lives only
        # along the "arbitrary" time axis.
        compiler_params=pltpu.CompilerParams(
            dimension_semantics=("parallel", "arbitrary")),
    )(lt, w1b, b1b, w2b, b2b, nz)

    # --- unfold (nb, T, 6, 8, 128) -> (T, B, 6); split designs / outcomes ---
    flat = out.transpose(1, 0, 3, 4, 2).reshape(T, BP, 6)[:, :B, :]
    designs = flat[:, :, 0:2]
    outcomes = flat[:, :, 2:6]
    return designs, outcomes


def _reference(log_theta, w1, b1, w2, b2, noise):
    """Pure-JAX reference matching the PyTorch module semantics (batch-major)."""
    theta = jnp.exp(log_theta)
    B = log_theta.shape[0]
    T = noise.shape[0]
    y = jnp.zeros((B, 4), jnp.float32)
    scale = jnp.array(SCALE, jnp.float32)
    shift = jnp.array(SHIFT, jnp.float32)
    designs, outcomes = [], []
    for t in range(T):
        h = jnp.maximum(y @ w1 + b1.reshape(1, -1), 0.0)
        xi_raw = h @ w2 + b2.reshape(1, -1)
        xi = shift + scale * jnp.tanh(xi_raw)
        m1, m2, l1, l2 = [theta[:, i:i + 1] for i in range(4)]
        q1, q2, dq1, dq2 = [y[:, i:i + 1] for i in range(4)]
        u1, u2 = xi[:, 0:1], xi[:, 1:2]
        s1, s2, c2, s12 = jnp.sin(q1), jnp.sin(q2), jnp.cos(q2), jnp.sin(q1 + q2)
        I_1, I_2 = m1 * l1 ** 2, m2 * l2 ** 2
        M_1 = I_1 + I_2 + m2 * l1 ** 2 + 2.0 * m2 * l1 * l2 * c2
        M_2 = I_2 + m2 * l1 * l2 * c2
        M_3, M_4 = M_2, I_2
        C_2 = -m2 * l1 * l2 * (2.0 * dq1 + dq2) * s2
        C_3 = 0.5 * m2 * l1 * l2 * (2.0 * dq1 + dq2) * s2
        C_4 = -0.5 * m2 * l1 * l2 * dq1 * s2
        tau_1 = -G * ((m1 + m2) * l1 * s1 + m2 * l2 * s12)
        tau_2 = -G * m2 * l2 * s12
        uu1 = u1 - K1 * dq1
        uu2 = u2 - K2 * dq2
        ddq2 = tau_2 + uu2 - C_3 * dq1 - C_4 * dq2
        ddq2 = ddq2 - M_3 / M_1 * (tau_1 + uu1 - C_2 * dq2)
        ddq2 = ddq2 / (M_4 - M_3 * M_2 / M_1)
        ddq1 = (tau_1 + uu1 - C_2 * dq2 - M_2 * ddq2) / M_1
        f = jnp.concatenate([dq1, dq2, ddq1, ddq2], axis=-1)
        y = y + DT * f + noise[t]
        designs.append(xi_raw)
        outcomes.append(y)
    return jnp.stack(designs), jnp.stack(outcomes)


if __name__ == "__main__":
    B = 8      # batch of latent samples (log_theta.shape[0])
    T = 8      # rollout horizon
    H = 32     # design-net hidden width

    key = jax.random.PRNGKey(0)
    k_theta, k_w1, k_b1, k_w2, k_b2, k_noise = jax.random.split(key, 6)

    # log_theta ~ N(0, 0.01 * I), matching the module's prior.
    log_theta = 0.1 * jax.random.normal(k_theta, (B, 4), dtype=jnp.float32)

    # Deterministic synthetic design-net parameters.
    w1 = 0.1 * jax.random.normal(k_w1, (4, H), dtype=jnp.float32)
    b1 = 0.1 * jax.random.normal(k_b1, (H,), dtype=jnp.float32)
    w2 = 0.1 * jax.random.normal(k_w2, (H, 2), dtype=jnp.float32)
    b2 = 0.1 * jax.random.normal(k_b2, (2,), dtype=jnp.float32)

    # Observation noise, pre-scaled by sqrt(diag(cov)) = sqrt(diffusion^2*dt + 1e-8).
    diffusion = jnp.array(DIFFUSION, dtype=jnp.float32)
    sqrt_diag = jnp.sqrt(diffusion ** 2 * DT + 1e-8)           # [4]
    noise = sqrt_diag * jax.random.normal(k_noise, (T, B, 4), dtype=jnp.float32)

    designs, outcomes = double_pendulum_forward(log_theta, w1, b1, w2, b2, noise)
    jax.block_until_ready((designs, outcomes))

    assert designs.shape == (T, B, 2) and outcomes.shape == (T, B, 4)
    assert jnp.all(jnp.isfinite(designs)) and jnp.all(jnp.isfinite(outcomes))

    ref_d, ref_o = _reference(log_theta, w1, b1, w2, b2, noise)
    assert jnp.allclose(designs, ref_d, rtol=5e-3, atol=5e-3)
    assert jnp.allclose(outcomes, ref_o, rtol=5e-3, atol=5e-3)

    print("KERNEL_OK")
</pallas_src>

<mosaic_0001>
module attributes {stable_mosaic.version = 11 : i64} {
  func.func @_rollout_kernel(%arg0: i32, %arg1: i32, %arg2: memref<1x4x8x128xf32, #tpu.memory_space<vmem>>, %arg3: memref<4x32x8x128xf32, #tpu.memory_space<vmem>>, %arg4: memref<32x8x128xf32, #tpu.memory_space<vmem>>, %arg5: memref<2x32x8x128xf32, #tpu.memory_space<vmem>>, %arg6: memref<2x8x128xf32, #tpu.memory_space<vmem>>, %arg7: memref<1x1x4x8x128xf32, #tpu.memory_space<vmem>>, %arg8: memref<1x1x6x8x128xf32, #tpu.memory_space<vmem>>, %arg9: memref<4x8x128xf32, #tpu.memory_space<vmem>>, %arg10: memref<5x8x128xf32, #tpu.memory_space<vmem>>) attributes {dimension_semantics = [#tpu.dimension_semantics<parallel>, #tpu.dimension_semantics<arbitrary>], iteration_bounds = array<i64: 1, 8>, scalar_prefetch = 0 : i64, scratch_operands = 2 : i64, tpu.core_type = #tpu.core_type<tc>, window_params = [{transform_indices = @transform_0, window_bounds = array<i64: 1, 4, 8, 128>}, {pipeline_mode = #tpu.pipeline_mode<synchronous>, transform_indices = @transform_1, window_bounds = array<i64: 4, 32, 8, 128>}, {pipeline_mode = #tpu.pipeline_mode<synchronous>, transform_indices = @transform_2, window_bounds = array<i64: 32, 8, 128>}, {pipeline_mode = #tpu.pipeline_mode<synchronous>, transform_indices = @transform_3, window_bounds = array<i64: 2, 32, 8, 128>}, {pipeline_mode = #tpu.pipeline_mode<synchronous>, transform_indices = @transform_4, window_bounds = array<i64: 2, 8, 128>}, {transform_indices = @transform_5, window_bounds = array<i64: 1, 1, 4, 8, 128>}, {transform_indices = @transform_6, window_bounds = array<i64: 1, 1, 6, 8, 128>}]} {
    %c0_i32 = arith.constant 0 : i32
    %0 = arith.cmpi eq, %arg1, %c0_i32 : i32
    %1 = arith.extui %0 : i1 to i32
    %c0_i32_0 = arith.constant 0 : i32
    %2 = arith.cmpi ne, %1, %c0_i32_0 : i32
    scf.if %2 {
      %c0_137 = arith.constant 0 : index
      %c0_138 = arith.constant 0 : index
      %c0_139 = arith.constant 0 : index
      %c0_140 = arith.constant 0 : index
      %193 = vector.load %arg2[%c0_137, %c0_138, %c0_139, %c0_140] : memref<1x4x8x128xf32, #tpu.memory_space<vmem>>, vector<1x4x8x128xf32>
      %194 = vector.shape_cast %193 : vector<1x4x8x128xf32> to vector<4x8x128xf32>
      %195 = math.exp %194 : vector<4x8x128xf32>
      %196 = vector.extract_strided_slice %195 {offsets = [0, 0, 0], sizes = [1, 8, 128], strides = [1, 1, 1]} : vector<4x8x128xf32> to vector<1x8x128xf32>
      %197 = vector.shape_cast %196 : vector<1x8x128xf32> to vector<8x128xf32>
      %198 = vector.extract_strided_slice %195 {offsets = [1, 0, 0], sizes = [1, 8, 128], strides = [1, 1, 1]} : vector<4x8x128xf32> to vector<1x8x128xf32>
      %199 = vector.shape_cast %198 : vector<1x8x128xf32> to vector<8x128xf32>
      %200 = vector.extract_strided_slice %195 {offsets = [2, 0, 0], sizes = [1, 8, 128], strides = [1, 1, 1]} : vector<4x8x128xf32> to vector<1x8x128xf32>
      %201 = vector.shape_cast %200 : vector<1x8x128xf32> to vector<8x128xf32>
      %202 = vector.extract_strided_slice %195 {offsets = [3, 0, 0], sizes = [1, 8, 128], strides = [1, 1, 1]} : vector<4x8x128xf32> to vector<1x8x128xf32>
      %203 = vector.shape_cast %202 : vector<1x8x128xf32> to vector<8x128xf32>
      %204 = arith.mulf %197, %201 : vector<8x128xf32>
      %205 = arith.mulf %204, %201 : vector<8x128xf32>
      %206 = arith.mulf %199, %203 : vector<8x128xf32>
      %207 = arith.mulf %206, %203 : vector<8x128xf32>
      %208 = arith.addf %205, %207 : vector<8x128xf32>
      %209 = arith.mulf %199, %201 : vector<8x128xf32>
      %210 = arith.mulf %209, %201 : vector<8x128xf32>
      %211 = arith.addf %208, %210 : vector<8x128xf32>
      %c0_141 = arith.constant 0 : index
      %c0_142 = arith.constant 0 : index
      %c0_143 = arith.constant 0 : index
      %212 = vector.load %arg10[%c0_141, %c0_142, %c0_143] : memref<5x8x128xf32, #tpu.memory_space<vmem>>, vector<1x8x128xf32>
      %213 = vector.shape_cast %212 : vector<1x8x128xf32> to vector<8x128xf32>
      %214 = vector.shape_cast %211 : vector<8x128xf32> to vector<1x8x128xf32>
      tpu.vector_store %arg10[%c0_141, %c0_142, %c0_143], %214 {strides = array<i32>} : memref<5x8x128xf32, #tpu.memory_space<vmem>>, vector<1x8x128xf32>,
      %c1_144 = arith.constant 1 : index
      %c0_145 = arith.constant 0 : index
      %c0_146 = arith.constant 0 : index
      %215 = vector.load %arg10[%c1_144, %c0_145, %c0_146] : memref<5x8x128xf32, #tpu.memory_space<vmem>>, vector<1x8x128xf32>
      %216 = vector.shape_cast %215 : vector<1x8x128xf32> to vector<8x128xf32>
      %217 = vector.shape_cast %207 : vector<8x128xf32> to vector<1x8x128xf32>
      tpu.vector_store %arg10[%c1_144, %c0_145, %c0_146], %217 {strides = array<i32>} : memref<5x8x128xf32, #tpu.memory_space<vmem>>, vector<1x8x128xf32>,
      %218 = arith.mulf %199, %201 : vector<8x128xf32>
      %219 = arith.mulf %218, %203 : vector<8x128xf32>
      %c2_147 = arith.constant 2 : index
      %c0_148 = arith.constant 0 : index
      %c0_149 = arith.constant 0 : index
      %220 = vector.load %arg10[%c2_147, %c0_148, %c0_149] : memref<5x8x128xf32, #tpu.memory_space<vmem>>, vector<1x8x128xf32>
      %221 = vector.shape_cast %220 : vector<1x8x128xf32> to vector<8x128xf32>
      %222 = vector.shape_cast %219 : vector<8x128xf32> to vector<1x8x128xf32>
      tpu.vector_store %arg10[%c2_147, %c0_148, %c0_149], %222 {strides = array<i32>} : memref<5x8x128xf32, #tpu.memory_space<vmem>>, vector<1x8x128xf32>,
      %223 = arith.addf %197, %199 : vector<8x128xf32>
      %cst_150 = arith.constant -9.810000e+00 : f32
      %224 = vector.broadcast %cst_150 : f32 to vector<8x128xf32>
      %225 = arith.mulf %224, %223 : vector<8x128xf32>
      %226 = arith.mulf %225, %201 : vector<8x128xf32>
      %c3_151 = arith.constant 3 : index
      %c0_152 = arith.constant 0 : index
      %c0_153 = arith.constant 0 : index
      %227 = vector.load %arg10[%c3_151, %c0_152, %c0_153] : memref<5x8x128xf32, #tpu.memory_space<vmem>>, vector<1x8x128xf32>
      %228 = vector.shape_cast %227 : vector<1x8x128xf32> to vector<8x128xf32>
      %229 = vector.shape_cast %226 : vector<8x128xf32> to vector<1x8x128xf32>
      tpu.vector_store %arg10[%c3_151, %c0_152, %c0_153], %229 {strides = array<i32>} : memref<5x8x128xf32, #tpu.memory_space<vmem>>, vector<1x8x128xf32>,
      %cst_154 = arith.constant -9.810000e+00 : f32
      %230 = vector.broadcast %cst_154 : f32 to vector<8x128xf32>
      %231 = arith.mulf %230, %199 : vector<8x128xf32>
      %232 = arith.mulf %231, %203 : vector<8x128xf32>
      %c4_155 = arith.constant 4 : index
      %c0_156 = arith.constant 0 : index
      %c0_157 = arith.constant 0 : index
      %233 = vector.load %arg10[%c4_155, %c0_156, %c0_157] : memref<5x8x128xf32, #tpu.memory_space<vmem>>, vector<1x8x128xf32>
      %234 = vector.shape_cast %233 : vector<1x8x128xf32> to vector<8x128xf32>
      %235 = vector.shape_cast %232 : vector<8x128xf32> to vector<1x8x128xf32>
      tpu.vector_store %arg10[%c4_155, %c0_156, %c0_157], %235 {strides = array<i32>} : memref<5x8x128xf32, #tpu.memory_space<vmem>>, vector<1x8x128xf32>,
      %cst_158 = arith.constant 0.000000e+00 : f32
      %236 = vector.broadcast %cst_158 : f32 to vector<4x8x128xf32>
      %c0_159 = arith.constant 0 : index
      %c0_160 = arith.constant 0 : index
      %c0_161 = arith.constant 0 : index
      %237 = vector.load %arg9[%c0_159, %c0_160, %c0_161] : memref<4x8x128xf32, #tpu.memory_space<vmem>>, vector<4x8x128xf32>
      tpu.vector_store %arg9[%c0_159, %c0_160, %c0_161], %236 {strides = array<i32>} : memref<4x8x128xf32, #tpu.memory_space<vmem>>, vector<4x8x128xf32>,
    } else {
    }
    %c0 = arith.constant 0 : index
    %c0_1 = arith.constant 0 : index
    %c0_2 = arith.constant 0 : index
    %3 = vector.load %arg9[%c0, %c0_1, %c0_2] : memref<4x8x128xf32, #tpu.memory_space<vmem>>, vector<1x8x128xf32>
    %4 = vector.shape_cast %3 : vector<1x8x128xf32> to vector<8x128xf32>
    %c1 = arith.constant 1 : index
    %c0_3 = arith.constant 0 : index
    %c0_4 = arith.constant 0 : index
    %5 = vector.load %arg9[%c1, %c0_3, %c0_4] : memref<4x8x128xf32, #tpu.memory_space<vmem>>, vector<1x8x128xf32>
    %6 = vector.shape_cast %5 : vector<1x8x128xf32> to vector<8x128xf32>
    %c2 = arith.constant 2 : index
    %c0_5 = arith.constant 0 : index
    %c0_6 = arith.constant 0 : index
    %7 = vector.load %arg9[%c2, %c0_5, %c0_6] : memref<4x8x128xf32, #tpu.memory_space<vmem>>, vector<1x8x128xf32>
    %8 = vector.shape_cast %7 : vector<1x8x128xf32> to vector<8x128xf32>
    %c3 = arith.constant 3 : index
    %c0_7 = arith.constant 0 : index
    %c0_8 = arith.constant 0 : index
    %9 = vector.load %arg9[%c3, %c0_7, %c0_8] : memref<4x8x128xf32, #tpu.memory_space<vmem>>, vector<1x8x128xf32>
    %10 = vector.shape_cast %9 : vector<1x8x128xf32> to vector<8x128xf32>
    %c0_9 = arith.constant 0 : index
    %c0_10 = arith.constant 0 : index
    %c0_11 = arith.constant 0 : index
    %c0_12 = arith.constant 0 : index
    %11 = vector.load %arg3[%c0_9, %c0_10, %c0_11, %c0_12] : memref<4x32x8x128xf32, #tpu.memory_space<vmem>>, vector<1x32x8x128xf32>
    %12 = vector.shape_cast %11 : vector<1x32x8x128xf32> to vector<32x8x128xf32>
    %13 = vector.shape_cast %4 : vector<8x128xf32> to vector<1x8x128xf32>
    %14 = vector.broadcast %13 : vector<1x8x128xf32> to vector<32x8x128xf32>
    %15 = arith.mulf %12, %14 : vector<32x8x128xf32>
    %c1_13 = arith.constant 1 : index
    %c0_14 = arith.constant 0 : index
    %c0_15 = arith.constant 0 : index
    %c0_16 = arith.constant 0 : index
    %16 = vector.load %arg3[%c1_13, %c0_14, %c0_15, %c0_16] : memref<4x32x8x128xf32, #tpu.memory_space<vmem>>, vector<1x32x8x128xf32>
    %17 = vector.shape_cast %16 : vector<1x32x8x128xf32> to vector<32x8x128xf32>
    %18 = vector.shape_cast %6 : vector<8x128xf32> to vector<1x8x128xf32>
    %19 = vector.broadcast %18 : vector<1x8x128xf32> to vector<32x8x128xf32>
    %20 = arith.mulf %17, %19 : vector<32x8x128xf32>
    %21 = arith.addf %15, %20 : vector<32x8x128xf32>
    %c2_17 = arith.constant 2 : index
    %c0_18 = arith.constant 0 : index
    %c0_19 = arith.constant 0 : index
    %c0_20 = arith.constant 0 : index
    %22 = vector.load %arg3[%c2_17, %c0_18, %c0_19, %c0_20] : memref<4x32x8x128xf32, #tpu.memory_space<vmem>>, vector<1x32x8x128xf32>
    %23 = vector.shape_cast %22 : vector<1x32x8x128xf32> to vector<32x8x128xf32>
    %24 = vector.shape_cast %8 : vector<8x128xf32> to vector<1x8x128xf32>
    %25 = vector.broadcast %24 : vector<1x8x128xf32> to vector<32x8x128xf32>
    %26 = arith.mulf %23, %25 : vector<32x8x128xf32>
    %27 = arith.addf %21, %26 : vector<32x8x128xf32>
    %c3_21 = arith.constant 3 : index
    %c0_22 = arith.constant 0 : index
    %c0_23 = arith.constant 0 : index
    %c0_24 = arith.constant 0 : index
    %28 = vector.load %arg3[%c3_21, %c0_22, %c0_23, %c0_24] : memref<4x32x8x128xf32, #tpu.memory_space<vmem>>, vector<1x32x8x128xf32>
    %29 = vector.shape_cast %28 : vector<1x32x8x128xf32> to vector<32x8x128xf32>
    %30 = vector.shape_cast %10 : vector<8x128xf32> to vector<1x8x128xf32>
    %31 = vector.broadcast %30 : vector<1x8x128xf32> to vector<32x8x128xf32>
    %32 = arith.mulf %29, %31 : vector<32x8x128xf32>
    %33 = arith.addf %27, %32 : vector<32x8x128xf32>
    %c0_25 = arith.constant 0 : index
    %c0_26 = arith.constant 0 : index
    %c0_27 = arith.constant 0 : index
    %34 = vector.load %arg4[%c0_25, %c0_26, %c0_27] : memref<32x8x128xf32, #tpu.memory_space<vmem>>, vector<32x8x128xf32>
    %35 = arith.addf %33, %34 : vector<32x8x128xf32>
    %cst = arith.constant 0.000000e+00 : f32
    %36 = vector.broadcast %cst : f32 to vector<32x8x128xf32>
    %37 = arith.maximumf %35, %36 : vector<32x8x128xf32>
    %c0_28 = arith.constant 0 : index
    %c0_29 = arith.constant 0 : index
    %c0_30 = arith.constant 0 : index
    %c0_31 = arith.constant 0 : index
    %38 = vector.load %arg5[%c0_28, %c0_29, %c0_30, %c0_31] : memref<2x32x8x128xf32, #tpu.memory_space<vmem>>, vector<1x32x8x128xf32>
    %39 = vector.shape_cast %38 : vector<1x32x8x128xf32> to vector<32x8x128xf32>
    %40 = arith.mulf %39, %37 : vector<32x8x128xf32>
    %cst_32 = arith.constant dense<0.000000e+00> : vector<8x128xf32>
    %41 = vector.multi_reduction <add>, %40, %cst_32 [0] : vector<32x8x128xf32> to vector<8x128xf32>
    %c0_33 = arith.constant 0 : index
    %c0_34 = arith.constant 0 : index
    %c0_35 = arith.constant 0 : index
    %42 = vector.load %arg6[%c0_33, %c0_34, %c0_35] : memref<2x8x128xf32, #tpu.memory_space<vmem>>, vector<1x8x128xf32>
    %43 = vector.shape_cast %42 : vector<1x8x128xf32> to vector<8x128xf32>
    %44 = arith.addf %41, %43 : vector<8x128xf32>
    %c1_36 = arith.constant 1 : index
    %c0_37 = arith.constant 0 : index
    %c0_38 = arith.constant 0 : index
    %c0_39 = arith.constant 0 : index
    %45 = vector.load %arg5[%c1_36, %c0_37, %c0_38, %c0_39] : memref<2x32x8x128xf32, #tpu.memory_space<vmem>>, vector<1x32x8x128xf32>
    %46 = vector.shape_cast %45 : vector<1x32x8x128xf32> to vector<32x8x128xf32>
    %47 = arith.mulf %46, %37 : vector<32x8x128xf32>
    %cst_40 = arith.constant dense<0.000000e+00> : vector<8x128xf32>
    %48 = vector.multi_reduction <add>, %47, %cst_40 [0] : vector<32x8x128xf32> to vector<8x128xf32>
    %c1_41 = arith.constant 1 : index
    %c0_42 = arith.constant 0 : index
    %c0_43 = arith.constant 0 : index
    %49 = vector.load %arg6[%c1_41, %c0_42, %c0_43] : memref<2x8x128xf32, #tpu.memory_space<vmem>>, vector<1x8x128xf32>
    %50 = vector.shape_cast %49 : vector<1x8x128xf32> to vector<8x128xf32>
    %51 = arith.addf %48, %50 : vector<8x128xf32>
    %52 = math.tanh %44 : vector<8x128xf32>
    %cst_44 = arith.constant 4.000000e+00 : f32
    %53 = vector.broadcast %cst_44 : f32 to vector<8x128xf32>
    %54 = arith.mulf %53, %52 : vector<8x128xf32>
    %cst_45 = arith.constant 0.000000e+00 : f32
    %55 = vector.broadcast %cst_45 : f32 to vector<8x128xf32>
    %56 = arith.addf %55, %54 : vector<8x128xf32>
    %57 = math.tanh %51 : vector<8x128xf32>
    %cst_46 = arith.constant 2.000000e+00 : f32
    %58 = vector.broadcast %cst_46 : f32 to vector<8x128xf32>
    %59 = arith.mulf %58, %57 : vector<8x128xf32>
    %cst_47 = arith.constant 0.000000e+00 : f32
    %60 = vector.broadcast %cst_47 : f32 to vector<8x128xf32>
    %61 = arith.addf %60, %59 : vector<8x128xf32>
    %c0_48 = arith.constant 0 : index
    %c0_49 = arith.constant 0 : index
    %c0_50 = arith.constant 0 : index
    %62 = vector.load %arg10[%c0_48, %c0_49, %c0_50] : memref<5x8x128xf32, #tpu.memory_space<vmem>>, vector<1x8x128xf32>
    %63 = vector.shape_cast %62 : vector<1x8x128xf32> to vector<8x128xf32>
    %c1_51 = arith.constant 1 : index
    %c0_52 = arith.constant 0 : index
    %c0_53 = arith.constant 0 : index
    %64 = vector.load %arg10[%c1_51, %c0_52, %c0_53] : memref<5x8x128xf32, #tpu.memory_space<vmem>>, vector<1x8x128xf32>
    %65 = vector.shape_cast %64 : vector<1x8x128xf32> to vector<8x128xf32>
    %c2_54 = arith.constant 2 : index
    %c0_55 = arith.constant 0 : index
    %c0_56 = arith.constant 0 : index
    %66 = vector.load %arg10[%c2_54, %c0_55, %c0_56] : memref<5x8x128xf32, #tpu.memory_space<vmem>>, vector<1x8x128xf32>
    %67 = vector.shape_cast %66 : vector<1x8x128xf32> to vector<8x128xf32>
    %c3_57 = arith.constant 3 : index
    %c0_58 = arith.constant 0 : index
    %c0_59 = arith.constant 0 : index
    %68 = vector.load %arg10[%c3_57, %c0_58, %c0_59] : memref<5x8x128xf32, #tpu.memory_space<vmem>>, vector<1x8x128xf32>
    %69 = vector.shape_cast %68 : vector<1x8x128xf32> to vector<8x128xf32>
    %c4 = arith.constant 4 : index
    %c0_60 = arith.constant 0 : index
    %c0_61 = arith.constant 0 : index
    %70 = vector.load %arg10[%c4, %c0_60, %c0_61] : memref<5x8x128xf32, #tpu.memory_space<vmem>>, vector<1x8x128xf32>
    %71 = vector.shape_cast %70 : vector<1x8x128xf32> to vector<8x128xf32>
    %72 = math.sin %4 : vector<8x128xf32>
    %73 = math.sin %6 : vector<8x128xf32>
    %74 = math.cos %6 : vector<8x128xf32>
    %75 = arith.addf %4, %6 : vector<8x128xf32>
    %76 = math.sin %75 : vector<8x128xf32>
    %cst_62 = arith.constant 2.000000e+00 : f32
    %77 = vector.broadcast %cst_62 : f32 to vector<8x128xf32>
    %78 = arith.mulf %77, %67 : vector<8x128xf32>
    %79 = arith.mulf %78, %74 : vector<8x128xf32>
    %80 = arith.addf %63, %79 : vector<8x128xf32>
    %81 = arith.mulf %67, %74 : vector<8x128xf32>
    %82 = arith.addf %65, %81 : vector<8x128xf32>
    %cst_63 = arith.constant 0.000000e+00 : f32
    %83 = vector.broadcast %cst_63 : f32 to vector<8x128xf32>
    %84 = arith.subf %83, %67 : vector<8x128xf32>
    %cst_64 = arith.constant 2.000000e+00 : f32
    %85 = vector.broadcast %cst_64 : f32 to vector<8x128xf32>
    %86 = arith.mulf %85, %8 : vector<8x128xf32>
    %87 = arith.addf %86, %10 : vector<8x128xf32>
    %88 = arith.mulf %84, %87 : vector<8x128xf32>
    %89 = arith.mulf %88, %73 : vector<8x128xf32>
    %cst_65 = arith.constant 5.000000e-01 : f32
    %90 = vector.broadcast %cst_65 : f32 to vector<8x128xf32>
    %91 = arith.mulf %90, %67 : vector<8x128xf32>
    %cst_66 = arith.constant 2.000000e+00 : f32
    %92 = vector.broadcast %cst_66 : f32 to vector<8x128xf32>
    %93 = arith.mulf %92, %8 : vector<8x128xf32>
    %94 = arith.addf %93, %10 : vector<8x128xf32>
    %95 = arith.mulf %91, %94 : vector<8x128xf32>
    %96 = arith.mulf %95, %73 : vector<8x128xf32>
    %cst_67 = arith.constant -5.000000e-01 : f32
    %97 = vector.broadcast %cst_67 : f32 to vector<8x128xf32>
    %98 = arith.mulf %97, %67 : vector<8x128xf32>
    %99 = arith.mulf %98, %8 : vector<8x128xf32>
    %100 = arith.mulf %99, %73 : vector<8x128xf32>
    %101 = arith.mulf %69, %72 : vector<8x128xf32>
    %102 = arith.mulf %71, %76 : vector<8x128xf32>
    %103 = arith.addf %101, %102 : vector<8x128xf32>
    %104 = arith.mulf %71, %76 : vector<8x128xf32>
    %cst_68 = arith.constant 1.000000e-01 : f32
    %105 = vector.broadcast %cst_68 : f32 to vector<8x128xf32>
    %106 = arith.mulf %105, %8 : vector<8x128xf32>
    %107 = arith.subf %56, %106 : vector<8x128xf32>
    %cst_69 = arith.constant 1.000000e-01 : f32
    %108 = vector.broadcast %cst_69 : f32 to vector<8x128xf32>
    %109 = arith.mulf %108, %10 : vector<8x128xf32>
    %110 = arith.subf %61, %109 : vector<8x128xf32>
    %111 = tpu.reciprocal %80 {approx = true} : vector<8x128xf32> -> vector<8x128xf32>
    %112 = arith.mulf %80, %111 : vector<8x128xf32>
    %cst_70 = arith.constant 2.000000e+00 : f32
    %113 = vector.broadcast %cst_70 : f32 to vector<8x128xf32>
    %114 = arith.subf %113, %112 : vector<8x128xf32>
    %115 = arith.mulf %111, %114 : vector<8x128xf32>
    %116 = arith.addf %103, %107 : vector<8x128xf32>
    %117 = arith.mulf %89, %10 : vector<8x128xf32>
    %118 = arith.subf %116, %117 : vector<8x128xf32>
    %119 = arith.mulf %82, %82 : vector<8x128xf32>
    %120 = arith.mulf %119, %115 : vector<8x128xf32>
    %121 = arith.subf %65, %120 : vector<8x128xf32>
    %122 = tpu.reciprocal %121 {approx = true} : vector<8x128xf32> -> vector<8x128xf32>
    %123 = arith.mulf %121, %122 : vector<8x128xf32>
    %cst_71 = arith.constant 2.000000e+00 : f32
    %124 = vector.broadcast %cst_71 : f32 to vector<8x128xf32>
    %125 = arith.subf %124, %123 : vector<8x128xf32>
    %126 = arith.mulf %122, %125 : vector<8x128xf32>
    %127 = arith.addf %104, %110 : vector<8x128xf32>
    %128 = arith.mulf %96, %8 : vector<8x128xf32>
    %129 = arith.subf %127, %128 : vector<8x128xf32>
    %130 = arith.mulf %100, %10 : vector<8x128xf32>
    %131 = arith.subf %129, %130 : vector<8x128xf32>
    %132 = arith.mulf %82, %115 : vector<8x128xf32>
    %133 = arith.mulf %132, %118 : vector<8x128xf32>
    %134 = arith.subf %131, %133 : vector<8x128xf32>
    %135 = arith.mulf %134, %126 : vector<8x128xf32>
    %136 = arith.mulf %82, %135 : vector<8x128xf32>
    %137 = arith.subf %118, %136 : vector<8x128xf32>
    %138 = arith.mulf %137, %115 : vector<8x128xf32>
    %cst_72 = arith.constant 5.000000e-02 : f32
    %139 = vector.broadcast %cst_72 : f32 to vector<8x128xf32>
    %140 = arith.mulf %139, %8 : vector<8x128xf32>
    %141 = arith.addf %4, %140 : vector<8x128xf32>
    %c0_73 = arith.constant 0 : index
    %c0_74 = arith.constant 0 : index
    %c0_75 = arith.constant 0 : index
    %c0_76 = arith.constant 0 : index
    %c0_77 = arith.constant 0 : index
    %142 = vector.load %arg7[%c0_73, %c0_74, %c0_75, %c0_76, %c0_77] : memref<1x1x4x8x128xf32, #tpu.memory_space<vmem>>, vector<1x1x1x8x128xf32>
    %143 = vector.shape_cast %142 : vector<1x1x1x8x128xf32> to vector<8x128xf32>
    %144 = arith.addf %141, %143 : vector<8x128xf32>
    %cst_78 = arith.constant 5.000000e-02 : f32
    %145 = vector.broadcast %cst_78 : f32 to vector<8x128xf32>
    %146 = arith.mulf %145, %10 : vector<8x128xf32>
    %147 = arith.addf %6, %146 : vector<8x128xf32>
    %c0_79 = arith.constant 0 : index
    %c0_80 = arith.constant 0 : index
    %c1_81 = arith.constant 1 : index
    %c0_82 = arith.constant 0 : index
    %c0_83 = arith.constant 0 : index
    %148 = vector.load %arg7[%c0_79, %c0_80, %c1_81, %c0_82, %c0_83] : memref<1x1x4x8x128xf32, #tpu.memory_space<vmem>>, vector<1x1x1x8x128xf32>
    %149 = vector.shape_cast %148 : vector<1x1x1x8x128xf32> to vector<8x128xf32>
    %150 = arith.addf %147, %149 : vector<8x128xf32>
    %cst_84 = arith.constant 5.000000e-02 : f32
    %151 = vector.broadcast %cst_84 : f32 to vector<8x128xf32>
    %152 = arith.mulf %151, %138 : vector<8x128xf32>
    %153 = arith.addf %8, %152 : vector<8x128xf32>
    %c0_85 = arith.constant 0 : index
    %c0_86 = arith.constant 0 : index
    %c2_87 = arith.constant 2 : index
    %c0_88 = arith.constant 0 : index
    %c0_89 = arith.constant 0 : index
    %154 = vector.load %arg7[%c0_85, %c0_86, %c2_87, %c0_88, %c0_89] : memref<1x1x4x8x128xf32, #tpu.memory_space<vmem>>, vector<1x1x1x8x128xf32>
    %155 = vector.shape_cast %154 : vector<1x1x1x8x128xf32> to vector<8x128xf32>
    %156 = arith.addf %153, %155 : vector<8x128xf32>
    %cst_90 = arith.constant 5.000000e-02 : f32
    %157 = vector.broadcast %cst_90 : f32 to vector<8x128xf32>
    %158 = arith.mulf %157, %135 : vector<8x128xf32>
    %159 = arith.addf %10, %158 : vector<8x128xf32>
    %c0_91 = arith.constant 0 : index
    %c0_92 = arith.constant 0 : index
    %c3_93 = arith.constant 3 : index
    %c0_94 = arith.constant 0 : index
    %c0_95 = arith.constant 0 : index
    %160 = vector.load %arg7[%c0_91, %c0_92, %c3_93, %c0_94, %c0_95] : memref<1x1x4x8x128xf32, #tpu.memory_space<vmem>>, vector<1x1x1x8x128xf32>
    %161 = vector.shape_cast %160 : vector<1x1x1x8x128xf32> to vector<8x128xf32>
    %162 = arith.addf %159, %161 : vector<8x128xf32>
    %c0_96 = arith.constant 0 : index
    %c0_97 = arith.constant 0 : index
    %c0_98 = arith.constant 0 : index
    %163 = vector.load %arg9[%c0_96, %c0_97, %c0_98] : memref<4x8x128xf32, #tpu.memory_space<vmem>>, vector<1x8x128xf32>
    %164 = vector.shape_cast %163 : vector<1x8x128xf32> to vector<8x128xf32>
    %165 = vector.shape_cast %144 : vector<8x128xf32> to vector<1x8x128xf32>
    tpu.vector_store %arg9[%c0_96, %c0_97, %c0_98], %165 {strides = array<i32>} : memref<4x8x128xf32, #tpu.memory_space<vmem>>, vector<1x8x128xf32>,
    %c1_99 = arith.constant 1 : index
    %c0_100 = arith.constant 0 : index
    %c0_101 = arith.constant 0 : index
    %166 = vector.load %arg9[%c1_99, %c0_100, %c0_101] : memref<4x8x128xf32, #tpu.memory_space<vmem>>, vector<1x8x128xf32>
    %167 = vector.shape_cast %166 : vector<1x8x128xf32> to vector<8x128xf32>
    %168 = vector.shape_cast %150 : vector<8x128xf32> to vector<1x8x128xf32>
    tpu.vector_store %arg9[%c1_99, %c0_100, %c0_101], %168 {strides = array<i32>} : memref<4x8x128xf32, #tpu.memory_space<vmem>>, vector<1x8x128xf32>,
    %c2_102 = arith.constant 2 : index
    %c0_103 = arith.constant 0 : index
    %c0_104 = arith.constant 0 : index
    %169 = vector.load %arg9[%c2_102, %c0_103, %c0_104] : memref<4x8x128xf32, #tpu.memory_space<vmem>>, vector<1x8x128xf32>
    %170 = vector.shape_cast %169 : vector<1x8x128xf32> to vector<8x128xf32>
    %171 = vector.shape_cast %156 : vector<8x128xf32> to vector<1x8x128xf32>
    tpu.vector_store %arg9[%c2_102, %c0_103, %c0_104], %171 {strides = array<i32>} : memref<4x8x128xf32, #tpu.memory_space<vmem>>, vector<1x8x128xf32>,
    %c3_105 = arith.constant 3 : index
    %c0_106 = arith.constant 0 : index
    %c0_107 = arith.constant 0 : index
    %172 = vector.load %arg9[%c3_105, %c0_106, %c0_107] : memref<4x8x128xf32, #tpu.memory_space<vmem>>, vector<1x8x128xf32>
    %173 = vector.shape_cast %172 : vector<1x8x128xf32> to vector<8x128xf32>
    %174 = vector.shape_cast %162 : vector<8x128xf32> to vector<1x8x128xf32>
    tpu.vector_store %arg9[%c3_105, %c0_106, %c0_107], %174 {strides = array<i32>} : memref<4x8x128xf32, #tpu.memory_space<vmem>>, vector<1x8x128xf32>,
    %c0_108 = arith.constant 0 : index
    %c0_109 = arith.constant 0 : index
    %c0_110 = arith.constant 0 : index
    %c0_111 = arith.constant 0 : index
    %c0_112 = arith.constant 0 : index
    %175 = vector.load %arg8[%c0_108, %c0_109, %c0_110, %c0_111, %c0_112] : memref<1x1x6x8x128xf32, #tpu.memory_space<vmem>>, vector<1x1x1x8x128xf32>
    %176 = vector.shape_cast %175 : vector<1x1x1x8x128xf32> to vector<8x128xf32>
    %177 = vector.shape_cast %44 : vector<8x128xf32> to vector<1x1x1x8x128xf32>
    tpu.vector_store %arg8[%c0_108, %c0_109, %c0_110, %c0_111, %c0_112], %177 {strides = array<i32>} : memref<1x1x6x8x128xf32, #tpu.memory_space<vmem>>, vector<1x1x1x8x128xf32>,
    %c0_113 = arith.constant 0 : index
    %c0_114 = arith.constant 0 : index
    %c1_115 = arith.constant 1 : index
    %c0_116 = arith.constant 0 : index
    %c0_117 = arith.constant 0 : index
    %178 = vector.load %arg8[%c0_113, %c0_114, %c1_115, %c0_116, %c0_117] : memref<1x1x6x8x128xf32, #tpu.memory_space<vmem>>, vector<1x1x1x8x128xf32>
    %179 = vector.shape_cast %178 : vector<1x1x1x8x128xf32> to vector<8x128xf32>
    %180 = vector.shape_cast %51 : vector<8x128xf32> to vector<1x1x1x8x128xf32>
    tpu.vector_store %arg8[%c0_113, %c0_114, %c1_115, %c0_116, %c0_117], %180 {strides = array<i32>} : memref<1x1x6x8x128xf32, #tpu.memory_space<vmem>>, vector<1x1x1x8x128xf32>,
    %c0_118 = arith.constant 0 : index
    %c0_119 = arith.constant 0 : index
    %c2_120 = arith.constant 2 : index
    %c0_121 = arith.constant 0 : index
    %c0_122 = arith.constant 0 : index
    %181 = vector.load %arg8[%c0_118, %c0_119, %c2_120, %c0_121, %c0_122] : memref<1x1x6x8x128xf32, #tpu.memory_space<vmem>>, vector<1x1x1x8x128xf32>
    %182 = vector.shape_cast %181 : vector<1x1x1x8x128xf32> to vector<8x128xf32>
    %183 = vector.shape_cast %144 : vector<8x128xf32> to vector<1x1x1x8x128xf32>
    tpu.vector_store %arg8[%c0_118, %c0_119, %c2_120, %c0_121, %c0_122], %183 {strides = array<i32>} : memref<1x1x6x8x128xf32, #tpu.memory_space<vmem>>, vector<1x1x1x8x128xf32>,
    %c0_123 = arith.constant 0 : index
    %c0_124 = arith.constant 0 : index
    %c3_125 = arith.constant 3 : index
    %c0_126 = arith.constant 0 : index
    %c0_127 = arith.constant 0 : index
    %184 = vector.load %arg8[%c0_123, %c0_124, %c3_125, %c0_126, %c0_127] : memref<1x1x6x8x128xf32, #tpu.memory_space<vmem>>, vector<1x1x1x8x128xf32>
    %185 = vector.shape_cast %184 : vector<1x1x1x8x128xf32> to vector<8x128xf32>
    %186 = vector.shape_cast %150 : vector<8x128xf32> to vector<1x1x1x8x128xf32>
    tpu.vector_store %arg8[%c0_123, %c0_124, %c3_125, %c0_126, %c0_127], %186 {strides = array<i32>} : memref<1x1x6x8x128xf32, #tpu.memory_space<vmem>>, vector<1x1x1x8x128xf32>,
    %c0_128 = arith.constant 0 : index
    %c0_129 = arith.constant 0 : index
    %c4_130 = arith.constant 4 : index
    %c0_131 = arith.constant 0 : index
    %c0_132 = arith.constant 0 : index
    %187 = vector.load %arg8[%c0_128, %c0_129, %c4_130, %c0_131, %c0_132] : memref<1x1x6x8x128xf32, #tpu.memory_space<vmem>>, vector<1x1x1x8x128xf32>
    %188 = vector.shape_cast %187 : vector<1x1x1x8x128xf32> to vector<8x128xf32>
    %189 = vector.shape_cast %156 : vector<8x128xf32> to vector<1x1x1x8x128xf32>
    tpu.vector_store %arg8[%c0_128, %c0_129, %c4_130, %c0_131, %c0_132], %189 {strides = array<i32>} : memref<1x1x6x8x128xf32, #tpu.memory_space<vmem>>, vector<1x1x1x8x128xf32>,
    %c0_133 = arith.constant 0 : index
    %c0_134 = arith.constant 0 : index
    %c5 = arith.constant 5 : index
    %c0_135 = arith.constant 0 : index
    %c0_136 = arith.constant 0 : index
    %190 = vector.load %arg8[%c0_133, %c0_134, %c5, %c0_135, %c0_136] : memref<1x1x6x8x128xf32, #tpu.memory_space<vmem>>, vector<1x1x1x8x128xf32>
    %191 = vector.shape_cast %190 : vector<1x1x1x8x128xf32> to vector<8x128xf32>
    %192 = vector.shape_cast %162 : vector<8x128xf32> to vector<1x1x1x8x128xf32>
    tpu.vector_store %arg8[%c0_133, %c0_134, %c5, %c0_135, %c0_136], %192 {strides = array<i32>} : memref<1x1x6x8x128xf32, #tpu.memory_space<vmem>>, vector<1x1x1x8x128xf32>,
    return
  }
  func.func @transform_0(%arg0: i32, %arg1: i32) -> (i32, i32, i32, i32) {
    %c0_i32 = arith.constant 0 : i32
    %c0_i32_0 = arith.constant 0 : i32
    %c0_i32_1 = arith.constant 0 : i32
    %c0_i32_2 = arith.constant 0 : i32
    return %arg0, %c0_i32, %c0_i32_0, %c0_i32_1 : i32, i32, i32, i32
  }
  func.func @transform_1(%arg0: i32, %arg1: i32) -> (i32, i32, i32, i32) {
    %c0_i32 = arith.constant 0 : i32
    %c0_i32_0 = arith.constant 0 : i32
    %c0_i32_1 = arith.constant 0 : i32
    %c0_i32_2 = arith.constant 0 : i32
    %c0_i32_3 = arith.constant 0 : i32
    return %c0_i32, %c0_i32_0, %c0_i32_1, %c0_i32_2 : i32, i32, i32, i32
  }
  func.func @transform_2(%arg0: i32, %arg1: i32) -> (i32, i32, i32) {
    %c0_i32 = arith.constant 0 : i32
    %c0_i32_0 = arith.constant 0 : i32
    %c0_i32_1 = arith.constant 0 : i32
    %c0_i32_2 = arith.constant 0 : i32
    return %c0_i32, %c0_i32_0, %c0_i32_1 : i32, i32, i32
  }
  func.func @transform_3(%arg0: i32, %arg1: i32) -> (i32, i32, i32, i32) {
    %c0_i32 = arith.constant 0 : i32
    %c0_i32_0 = arith.constant 0 : i32
    %c0_i32_1 = arith.constant 0 : i32
    %c0_i32_2 = arith.constant 0 : i32
    %c0_i32_3 = arith.constant 0 : i32
    return %c0_i32, %c0_i32_0, %c0_i32_1, %c0_i32_2 : i32, i32, i32, i32
  }
  func.func @transform_4(%arg0: i32, %arg1: i32) -> (i32, i32, i32) {
    %c0_i32 = arith.constant 0 : i32
    %c0_i32_0 = arith.constant 0 : i32
    %c0_i32_1 = arith.constant 0 : i32
    %c0_i32_2 = arith.constant 0 : i32
    return %c0_i32, %c0_i32_0, %c0_i32_1 : i32, i32, i32
  }
  func.func @transform_5(%arg0: i32, %arg1: i32) -> (i32, i32, i32, i32, i32) {
    %c0_i32 = arith.constant 0 : i32
    %c0_i32_0 = arith.constant 0 : i32
    %c0_i32_1 = arith.constant 0 : i32
    %c0_i32_2 = arith.constant 0 : i32
    return %arg0, %arg1, %c0_i32, %c0_i32_0, %c0_i32_1 : i32, i32, i32, i32, i32
  }
  func.func @transform_6(%arg0: i32, %arg1: i32) -> (i32, i32, i32, i32, i32) {
    %c0_i32 = arith.constant 0 : i32
    %c0_i32_0 = arith.constant 0 : i32
    %c0_i32_1 = arith.constant 0 : i32
    %c0_i32_2 = arith.constant 0 : i32
    return %arg0, %arg1, %c0_i32, %c0_i32_0, %c0_i32_1 : i32, i32, i32, i32, i32
  }
}

</mosaic_0001>

<bundles_post_ra>
// kernel: tpu_custom_call.1
= control target key start
LH: loop header
LB: loop body
LE: loop exit
PB: predicated region body
PF: predicated region fallthrough
CT: control target
= control target key end

     0   :  { %s3505_s0 = inlined_call_operand.hbm [shape: f32[1,4,8,128], index: 0, kind: input, shape index: {}]   ;;  %s3506_s1 = inlined_call_operand.hbm [shape: f32[4,32,8,128], index: 1, kind: input, shape index: {}]   ;;  %s3507_s2 = inlined_call_operand.hbm [shape: f32[32,8,128], index: 2, kind: input, shape index: {}]   ;;  %s3508_s3 = inlined_call_operand.hbm [shape: f32[2,32,8,128], index: 3, kind: input, shape index: {}]   ;;  %s3509_s4 = inlined_call_operand.hbm [shape: f32[2,8,128], index: 4, kind: input, shape index: {}]   ;;  %s3510_s5 = inlined_call_operand.hbm [shape: f32[1,8,4,8,128], index: 5, kind: input, shape index: {}]   ;;  %s3511_s6 = inlined_call_operand.hbm [shape: f32[1,8,6,8,128], index: 6, kind: output, shape index: {}]  }
   0x1   :  { %3544 = sst [smem:[#allocation41_spill]] %s3505_s0 }
   0x2   :  { %3545 = sst [smem:[#allocation42_spill]] %s3506_s1 }
   0x3   :  { %3546 = sst [smem:[#allocation43_spill]] %s3507_s2 }
   0x4   :  { %11 = vsyncpa [#allocation5], 0 }
   0x5   :  { %12 = vsyncpa [#allocation8], 0 }
   0x6   :  { %13 = vsyncpa [#allocation11], 0 }
   0x7   :  { %14 = vsyncpa [#allocation14], 0 }
   0x8   :  { %16 = vsyncpa [#allocation14 + $0x1], 0 }
   0x9   :  { %17 = vsyncpa [#allocation6], 0 }
   0xa   :  { %19 = vsyncpa [#allocation6 + $0x1], 0  ;;  %s2258_s21 = smov 0   ;;  %s2260_s22 = smov 0  }
   0xb   :  { %s2262_s23 = smov 0   ;;  %s2264_s24 = smov 0  }
   0xc   :  { %s2266_s25 = smov 0   ;;  %s2268_s26 = smov 0  }
   0xd LB: > { %s1735_s27 = sadd.s32 4294967295, %s2203_s26   ;;  %p1737_p0 = scmp.ge.s32.totalorder %s2203_s26, 1  ;;  %s2203_s26 = sphi %s2268_s26, %s25_s26   ;;  %s2199_s25 = sphi %s2266_s25, %s3705_s25   ;;  %s2195_s24 = sphi %s2264_s24, %s3704_s24   ;;  %s2191_s23 = sphi %s2262_s23, %s3703_s23   ;;  %s2187_s22 = sphi %s2260_s22, %s3702_s22   ;;  %s2183_s21 = sphi %s2258_s21, %s3701_s21  }
   0xe   : > { %p2292_p1 = scmp.eq.s32.totalorder %s1735_s27, 0  ;;  %p208_p2 = scmp.lt.s32.totalorder %s2203_s26, 9 }
   0xf   : > { %s2205_s30 = smov [#allocation7]   ;;  %s2206_s8 = smov [#allocation10]  }
  0x10   : > { %p2297_p3 = pnand %p1737_p0, %p208_p2  ;;  %s236_s7 = sshll.u32 %s2205_s30, 4  ;;  %s237_s7 = int_to_ptr.vmem [resolvable:$true] %s236_s7 }
  0x11   : > { %s262_s9 = sshll.u32 %s2206_s8, 4  ;;  %s2207_s11 = smov [#allocation4]   ;;  %s263_s9 = int_to_ptr.vmem [resolvable:$true] %s262_s9 }
  0x12   : > { %p1821_p4 = pneg %p2297_p3  ;;  %s223_s12 = sshll.u32 %s2207_s11, 4  ;;  %s224_s12 = int_to_ptr.vmem [resolvable:$true] %s223_s12 }
  0x13   : > { %s1964_s14 = scalar_lea.vmem %s237_s7, 16384  ;;  %p1972_p10 = scmp.lt.s32.totalorder %s237_s7, %s237_s7 }
  0x14   : > { %p2305_p5 = pnand %p1821_p4, %p2292_p1  ;;  %p1965_p7 = scmp.ne.s32.totalorder %s237_s7, %s1964_s14 }
  0x15   : > { %p1973_p11 = scmp.lt.s32.totalorder %s1964_s14, %s1964_s14 }
  0x16   : > { %p2311_p6 = pneg %p2305_p5 }
  0x17   : > { %p1974_p12 = por %p1973_p11, %p1972_p10 }
  0x18   : > { %p1967_p8 = pnand %p1965_p7, %p2311_p6 }
  0x1a   : > { %p1968_p9 = pneg %p1967_p8 }
  0x1c   : > { %p1975_p13 = pnand %p1974_p12, %p1968_p9 }
  0x1e   : > { %1978 = shalt.err (!%p1975_p13)
}
  0x1f   : > { %s3512_s15 = smov 128   ;;  %s3513_s16 = smov 8  }
  0x20   : > { %s3551_s1 = sld [smem:[#allocation42_spill]]  ;;  %s1990_s19 = scalar_lea.vmem %s263_s9, 8192 }
  0x21   : > { %p1991_p0 = scmp.ne.s32.totalorder %s263_s9, %s1990_s19  ;;  %p1998_p7 = scmp.lt.s32.totalorder %s263_s9, %s263_s9 }
  0x22   : > { %p1999_p8 = scmp.lt.s32.totalorder %s1990_s19, %s1990_s19 }
  0x23   : > { %p1993_p2 = pnand %p1991_p0, %p2311_p6 }
  0x24   : > { %p2000_p9 = por %p1999_p8, %p1998_p7 }
  0x25   : > { %p1994_p4 = pneg %p1993_p2 }
  0x26   : > { %1827 = dma.hbm_to_vmem [thread:$0]  (!%p2305_p5), %s3551_s1, 16384, %s237_s7, [#allocation8], %s3512_s15, %s3512_s15, %s3513_s16  }
  0x27   : > { %p2001_p10 = pnand %p2000_p9, %p1994_p4 }
  0x29   : > { %2004 = shalt.err (!%p2001_p10)
}
  0x2a   : > { %1833 = dma.hbm_to_vmem [thread:$0]  (!%p2305_p5), %s3508_s3, 8192, %s263_s9, [#allocation11], %s3512_s15, %s3512_s15, %s3513_s16  }
  0x2b   : > { %s2016_s7 = scalar_lea.vmem %s224_s12, 512  ;;  %p2024_p0 = scmp.lt.s32.totalorder %s224_s12, %s224_s12 }
  0x2c   : > { %p2017_p11 = scmp.ne.s32.totalorder %s224_s12, %s2016_s7  ;;  %p2025_p2 = scmp.lt.s32.totalorder %s2016_s7, %s2016_s7 }
  0x2e   : > { %p2019_p12 = pnand %p2017_p11, %p2311_p6  ;;  %p2026_p4 = por %p2025_p2, %p2024_p0 }
  0x30   : > { %p2020_p13 = pneg %p2019_p12 }
  0x32   : > { %p2027_p7 = pnand %p2026_p4, %p2020_p13 }
  0x34   : > { %2030 = shalt.err (!%p2027_p7)
}
  0x35   : > { %s3552_s0 = sld [smem:[#allocation41_spill]]  ;;  %s2210_s9 = smov [#allocation9]  }
  0x36   : > { %s249_s14 = sshll.u32 %s2210_s9, 4  ;;  %s2211_s17 = smov [#allocation12]   ;;  %s250_s14 = int_to_ptr.vmem [resolvable:$true] %s249_s14 }
  0x37   : > { %s275_s18 = sshll.u32 %s2211_s17, 4  ;;  %s2042_s19 = scalar_lea.vmem %s250_s14, 4096  ;;  %s276_s18 = int_to_ptr.vmem [resolvable:$true] %s275_s18 }
  0x38   : > { %p2043_p8 = scmp.ne.s32.totalorder %s250_s14, %s2042_s19  ;;  %p2050_p11 = scmp.lt.s32.totalorder %s250_s14, %s250_s14 }
  0x39   : > { %p2051_p12 = scmp.lt.s32.totalorder %s2042_s19, %s2042_s19 }
  0x3a   : > { %p2045_p9 = pnand %p2043_p8, %p2311_p6 }
  0x3b   : > { %1824 = dma.hbm_to_vmem [thread:$0]  (!%p2305_p5), %s3552_s0, 512, %s224_s12, [#allocation5], %s3512_s15, %s3512_s15, %s3513_s16  }
  0x3c   : > { %p2046_p10 = pneg %p2045_p9  ;;  %p2052_p13 = por %p2051_p12, %p2050_p11 }
  0x3e   : > { %p2053_p0 = pnand %p2052_p13, %p2046_p10 }
  0x40   : > { %2056 = shalt.err (!%p2053_p0)
}
  0x41   : > { %s3553_s2 = sld [smem:[#allocation43_spill]]  ;;  %s2068_s30 = scalar_lea.vmem %s276_s18, 256 }
  0x42   : > { %p2069_p2 = scmp.ne.s32.totalorder %s276_s18, %s2068_s30  ;;  %p2076_p8 = scmp.lt.s32.totalorder %s276_s18, %s276_s18 }
  0x43   : > { %p2077_p9 = scmp.lt.s32.totalorder %s2068_s30, %s2068_s30 }
  0x44   : > { %p2071_p4 = pnand %p2069_p2, %p2311_p6 }
  0x45   : > { %p2078_p10 = por %p2077_p9, %p2076_p8 }
  0x46   : > { %p2072_p7 = pneg %p2071_p4 }
  0x47   : > { %1830 = dma.hbm_to_vmem [thread:$0]  (!%p2305_p5), %s3553_s2, 4096, %s250_s14, [#allocation8], %s3512_s15, %s3512_s15, %s3513_s16  }
  0x48   : > { %p2079_p11 = pnand %p2078_p10, %p2072_p7 }
  0x4a   : > { %2082 = shalt.err (!%p2079_p11)
}
  0x4b   : > { %1836 = dma.hbm_to_vmem [thread:$0]  (!%p2305_p5), %s3509_s4, 256, %s276_s18, [#allocation11], %s3512_s15, %s3512_s15, %s3513_s16  }
  0x4c   : > { %s1736_s10 = sadd.s32 4294967294, %s2203_s26   ;;  %s34_s13 = sadd.s32 1, %s2199_s25 }
  0x4d   : > { %s156_s11 = sadd.s32 1, %s2191_s23  ;;  %p35_p6 = scmp.ge.s32.totalorder %s34_s13, 8 }
  0x4e   : > { %p163_p12 = scmp.ne.s32.totalorder %s2191_s23, %s2187_s22  ;;  %p164_p13 = scmp.eq.s32.totalorder %s2203_s26, 0 }
  0x4f   : > { %p169_p0 = scmp.ne.s32.totalorder %s2187_s22, %s2183_s21  ;;  %s3707_s13 = smov (%p35_p6, %s34_s13), 0 }
  0x50   : > { %p2375_p2 = por %p164_p13, %p163_p12  ;;  %s152_s17 = ssub.s32 %s2199_s25, %s3707_s13 }
  0x51   : > { %p2381_p5 = por %p2292_p1, %p169_p0  ;;  %p195_p4 = scmp.eq.s32.totalorder %s1735_s27, 7 }
  0x52   : > { %p154_p7 = scmp.eq.s32.totalorder %s152_s17, 0  ;;  %p201_p8 = scmp.eq.s32.totalorder %s1736_s10, 7 }
  0x53   : > { %p2389_p9 = por %p195_p4, %p163_p12  ;;  %p1850_p10 = scmp.lt.s32.totalorder %s2203_s26, 8 }
  0x54   : > { %s2395_s19 = scalar_select %p154_p7, %s2191_s23, %s156_s11  }
  0x55   : > { %s3556_s18 = scalar_select %p2389_p9, 1, 0 }
  0x56   : > { %p2397_p11 = por %p201_p8, %p169_p0  ;;  %s289_s20 = sand.u32 1, %s2191_s23  }
  0x57   : > { %s1744_s30 = sshll.u32 %s289_s20, 5  ;;  %s1782_s7 = sshll.u32 %s2199_s25, 9 }
  0x58   : > { %s3557_s12 = scalar_select %p2397_p11, 1, 0 }
  0x59   : > { %s301_s27 = scalar_lea.hbm %s3510_s5, %s1782_s7  ;;  %s293_s17 = scalar_lea.vmem [#allocation13], %s1744_s30 }
  0x5a   : > { %s302_s10 = sshll.u32 %s293_s17, 4  ;;  %p2408_p6 = pnand %p1850_p10, %p2375_p2  ;;  %s303_s10 = int_to_ptr.vmem [resolvable:$true] %s302_s10 }
  0x5b   : > { %s290_s11 = scalar_lea.sflag [#allocation14], %s289_s20  ;;  %s2096_s0 = scalar_lea.vmem %s303_s10, 512 }
  0x5c   : > { %p2085_p12 = pneg %p2408_p6  ;;  %p2097_p13 = scmp.ne.s32.totalorder %s303_s10, %s2096_s0 }
  0x5d   : > { %s2212_s1 = smov [#allocation13]  }
  0x5e   : > { %p2099_p0 = pnand %p2097_p13, %p2085_p12  ;;  %s2101_s2 = sshll.u32 %s2212_s1, 4  ;;  %s2102_s2 = int_to_ptr.vmem [resolvable:$false] %s2101_s2 }
  0x5f   : > { %s2103_s15 = scalar_lea.vmem %s2102_s2, 1024  ;;  %p2104_p7 = scmp.lt.s32.totalorder %s303_s10, %s2102_s2 }
  0x60   : > { %p2100_p4 = pneg %p2099_p0  ;;  %p2105_p8 = scmp.lt.s32.totalorder %s2103_s15, %s2096_s0 }
  0x62   : > { %p2106_p11 = por %p2105_p8, %p2104_p7 }
  0x64   : > { %p2107_p9 = pnand %p2106_p11, %p2100_p4 }
  0x66   : > { %2110 = shalt.err (!%p2107_p9)
}
  0x67   : > { %s3559_s9 = smov 8   ;;  %s3560_s30 = smov 128  }
  0x68   : > { %1840 = dma.hbm_to_vmem [thread:$0]  (!%p2408_p6), %s301_s27, 512, %s303_s10, %s290_s11, %s3560_s30, %s3560_s30, %s3559_s9  }
  0x69   : > { %314 = sbr.rel (%p2297_p3) target bundleno = 437 (0x1b5), region = 44 }
  0x6e   : > { %2162 = dma.done.wait (%p2292_p1), [#allocation5], 512  }
  0x6f   : > { %2164 = vsyncadd (%p2292_p1), [#allocation5], 4294966784 }
  0x70   : > { %2166 = dma.done.wait (%p2292_p1), [#allocation8], 20480  }
  0x71   : > { %2168 = vsyncadd (%p2292_p1), [#allocation8], 4294946816 }
  0x72   : > { %2170 = dma.done.wait (%p2292_p1), [#allocation11], 8448  }
  0x73   : > { %2172 = vsyncadd (%p2292_p1), [#allocation11], 4294958848  ;;  %s2434_s0 = sand.u32 1, %s2187_s22  }
  0x74   : > { %s1753_s1 = sshll.u32 %s2434_s0, 5  ;;  %s337_s2 = scalar_lea.sflag [#allocation14], %s2434_s0 }
  0x75   : > { %s2438_s29 = scalar_lea.vmem [#allocation13], %s1753_s1 }
  0x76   : > { %2174 = dma.done.wait (%p2381_p5), %s337_s2, 512  }
  0x77   : > { %2176 = vsyncadd (%p2381_p5), %s337_s2, 4294966784  ;;  %s1783_s16 = smul.u32 48, %s2434_s0  ;;  %p1754_p1 = scmp.ne.s32.totalorder %s2195_s24, 0 }
  0x79   : > { %s2445_s20 = scalar_lea.vmem [#allocation15], %s1783_s16  ;;  %372 = sbr.rel (%p1754_p1) target bundleno = 155 (0x9b), region = 72 }
  0x7e   : > { %v373_v0 = vld [vmem:[#allocation4] sm:$0xff]  ;;  %v374_v1 = vld [vmem:[#allocation4 + $0x8] sm:$0xff]  ;;  %v375_v2 = vld [vmem:[#allocation4 + $0x10] sm:$0xff]  ;;  %v2213_v6 = vmov 0.0  }
  0x7f   : > { %v376_v3 = vld [vmem:[#allocation4 + $0x18] sm:$0xff]  ;;  %v377_v4 = vmul.f32 1.442695, %v373_v0  ;;  %v379_v5 = vmul.f32 1.442695, %v374_v1  ;;  %408 = vst [vmem:[#allocation2 + $0x10] sm:$0xff] %v2213_v6 }
  0x80   : > { %409 = vst [vmem:[#allocation2] sm:$0xff] %v2213_v6  ;;  %410 = vst [vmem:[#allocation2 + $0x18] sm:$0xff] %v2213_v6  ;;  %v381_v7 = vmul.f32 1.442695, %v375_v2  ;;  %v383_v8 = vmul.f32 1.442695, %v376_v3 }
  0x81   : > { %411 = vst [vmem:[#allocation2 + $0x8] sm:$0xff] %v2213_v6  ;;  %1921 = vpow2.f32 %v377_v4 }
  0x82   : > { %1923 = vpow2.f32 %v379_v5 }
  0x83   : > { %1925 = vpow2.f32 %v381_v7 }
  0x84   : > { %1927 = vpow2.f32 %v383_v8 }
  0x8e   : > { %v1922_v9 = vpop.eup %1921 }
  0x8f   : > { %v1924_v10 = vpop.eup %1923 }
  0x90   : > { %v1926_v11 = vpop.eup %1925  ;;  %v399_v12 = vadd.f32 %v1924_v10, %v1922_v9  ;;  %v404_v13 = vmul.f32 -9.81, %v1924_v10 }
  0x91   : > { %v1928_v14 = vpop.eup %1927  ;;  %v385_v15 = vmul.f32 %v1926_v11, %v1922_v9  ;;  %v390_v16 = vmul.f32 %v1926_v11, %v1924_v10 }
  0x92   : > { %v387_v17 = vmul.f32 %v1928_v14, %v1924_v10  ;;  %v400_v18 = vmul.f32 -9.81, %v399_v12  ;;  %v405_v19 = vmul.f32 %v1928_v14, %v404_v13 }
  0x93   : > { %v386_v20 = vmul.f32 %v1926_v11, %v385_v15  ;;  %v396_v21 = vmul.f32 %v1928_v14, %v390_v16  ;;  %v391_v23 = vmul.f32 %v1926_v11, %v390_v16 }
  0x94   : > { %v388_v22 = vmul.f32 %v1928_v14, %v387_v17  ;;  %v401_v24 = vmul.f32 %v1926_v11, %v400_v18  ;;  %407 = vst [vmem:[#allocation3 + $0x20] sm:$0xff] %v405_v19 }
  0x95   : > { %398 = vst [vmem:[#allocation3 + $0x8] sm:$0xff] %v396_v21 }
  0x96   : > { %v389_v25 = vadd.f32 %v388_v22, %v386_v20  ;;  %395 = vst [vmem:[#allocation3 + $0x18] sm:$0xff] %v388_v22  ;;  %403 = vst [vmem:[#allocation3 + $0x10] sm:$0xff] %v401_v24 }
  0x98   : > { %v392_v26 = vadd.f32 %v391_v23, %v389_v25 }
  0x9a   : > { %393 = vst [vmem:[#allocation3] sm:$0xff] %v392_v26 }
  0x9b PF: > { %v2448_v27 = vld [vmem:[#allocation2 + $0x10] sm:$0xff]  ;;  %v2451_v31 = vld [vmem:[#allocation2] sm:$0xff]  ;;  %v419_v32 = vld [vmem:[#allocation7] sm:$0xff]  ;;  %s1796_s28 = smul.u32 768, %s2195_s24  ;;  %s1596_s14 = sshll.u32 %s2445_s20, 4  ;;  %s3457_s14 = int_to_ptr.vmem [resolvable:$true] %s1596_s14 }
  0x9c   : > { %3561 = vst [vmem:[#allocation21_spill] sm:$0xff] %v2448_v27  ;;  %v1084_v28 = vand.u32 2139095040, %v2448_v27  ;;  %3562 = vst [vmem:[#allocation22_spill] sm:$0xff] %v2451_v31  ;;  %v3515_v33 = vand.u32 2147483647, %v2448_v27  ;;  %v420_v34 = vld [vmem:[#allocation7 + $0x8] sm:$0xff]  ;;  %v2455_v47 = vmul.f32 %v419_v32, %v2448_v27 }
  0x9d   : > { %v421_v35 = vld [vmem:[#allocation7 + $0x10] sm:$0xff]  ;;  %v422_v36 = vld [vmem:[#allocation7 + $0x18] sm:$0xff]  ;;  %v423_v37 = vld [vmem:[#allocation7 + $0x20] sm:$0xff]  ;;  %v2458_v48 = vmul.f32 %v420_v34, %v2448_v27  ;;  %s3455_s27 = scalar_lea.hbm %s3511_s6, %s1796_s28  ;;  %s1581_s24 = scalar_lea.sflag [#allocation6], %s2434_s0 }
  0x9e   : > { %v1085_v29 = vshrl.u32 %v1084_v28, 23  ;;  %v424_v38 = vld [vmem:[#allocation7 + $0x28] sm:$0xff]  ;;  %v425_v39 = vld [vmem:[#allocation7 + $0x30] sm:$0xff]  ;;  %v426_v41 = vld [vmem:[#allocation7 + $0x38] sm:$0xff]  ;;  %v2462_v49 = vand.u32 8388607, %v3515_v33  ;;  %v2465_v53 = vmul.f32 %v421_v35, %v2448_v27  ;;  %v2468_v54 = vmul.f32 %v422_v36, %v2448_v27 }
  0x9f   : > { %v427_v42 = vld [vmem:[#allocation7 + $0x40] sm:$0xff]  ;;  %v428_v43 = vld [vmem:[#allocation7 + $0x48] sm:$0xff]  ;;  %v429_v44 = vld [vmem:[#allocation7 + $0x50] sm:$0xff]  ;;  %v2472_v59 = vmul.f32 %v423_v37, %v2448_v27  ;;  %v2475_v60 = vmul.f32 %v424_v38, %v2448_v27  ;;  %v2478_v61 = vmul.f32 %v425_v39, %v2448_v27  ;;  %v2481_v1 = vmul.f32 %v426_v41, %v2448_v27  ;;  %s2111_s17 = scalar_lea.vmem %s3457_s14, 768  ;;  %p3699_p2 = scmp.ne.s32.totalorder %s3556_s18, 0 }
  0xa0   : > { %v1755_v30 = vadd.s32 4294967169, %v1085_v29  ;;  %v430_v45 = vld [vmem:[#allocation7 + $0x58] sm:$0xff]  ;;  %v431_v46 = vld [vmem:[#allocation7 + $0x60] sm:$0xff]  ;;  %3563 = vst [vmem:[#allocation23_spill] sm:$0xff] %v2462_v49  ;;  %v432_v50 = vld [vmem:[#allocation7 + $0x68] sm:$0xff]  ;;  %v2484_v2 = vmul.f32 %v427_v42, %v2448_v27  ;;  %v2487_v3 = vmul.f32 %v428_v43, %v2448_v27  ;;  %v2490_v4 = vmul.f32 %v429_v44, %v2448_v27  ;;  %p2112_p3 = scmp.ne.s32.totalorder %s3457_s14, %s2111_s17  ;;  %s2220_s10 = smov [#allocation15]  }
  0xa1   : > { %v433_v51 = vld [vmem:[#allocation7 + $0x70] sm:$0xff]  ;;  %v434_v52 = vld [vmem:[#allocation7 + $0x78] sm:$0xff]  ;;  %v435_v56 = vld [vmem:[#allocation7 + $0x80] sm:$0xff]  ;;  %v2493_v8 = vmul.f32 %v430_v45, %v2448_v27  ;;  %v2496_v9 = vmul.f32 %v431_v46, %v2448_v27  ;;  %v2499_v10 = vmul.f32 %v432_v50, %v2448_v27  ;;  %s2115_s11 = sshll.u32 %s2220_s10, 4  ;;  %s2116_s11 = int_to_ptr.vmem [resolvable:$false] %s2115_s11 }
  0xa2   : > { %v1091_v40 = vadd.s32 1, %v1755_v30  ;;  %v436_v57 = vld [vmem:[#allocation7 + $0x88] sm:$0xff]  ;;  %v437_v58 = vld [vmem:[#allocation7 + $0x90] sm:$0xff]  ;;  %v438_v62 = vld [vmem:[#allocation7 + $0x98] sm:$0xff]  ;;  %v2503_v15 = vmul.f32 %v433_v51, %v2448_v27  ;;  %v2506_v16 = vmul.f32 %v434_v52, %v2448_v27  ;;  %v2509_v17 = vmul.f32 %v435_v56, %v2448_v27  ;;  %p2113_p5 = pnand %p2112_p3, %p3699_p2  ;;  %s2117_s15 = scalar_lea.vmem %s2116_s11, 1536 }
  0xa3   : > { %v439_v63 = vld [vmem:[#allocation7 + $0xa0] sm:$0xff]  ;;  %v440_v0 = vld [vmem:[#allocation7 + $0xa8] sm:$0xff]  ;;  %v441_v5 = vld [vmem:[#allocation7 + $0xb0] sm:$0xff]  ;;  %v2513_v21 = vmul.f32 %v436_v57, %v2448_v27  ;;  %v2516_v22 = vmul.f32 %v437_v58, %v2448_v27  ;;  %v2519_v23 = vmul.f32 %v438_v62, %v2448_v27  ;;  %p2118_p10 = scmp.lt.s32.totalorder %s3457_s14, %s2116_s11  ;;  %p2119_p11 = scmp.lt.s32.totalorder %s2117_s15, %s2111_s17 }
  0xa4   : > { %vm1092_vm0 = vcmp.gt.s32.totalorder %v1091_v40, 0  ;;  %v442_v6 = vld [vmem:[#allocation7 + $0xb8] sm:$0xff]  ;;  %v443_v7 = vld [vmem:[#allocation7 + $0xc0] sm:$0xff]  ;;  %v444_v12 = vld [vmem:[#allocation7 + $0xc8] sm:$0xff]  ;;  %v2522_v28 = vmul.f32 %v439_v63, %v2448_v27  ;;  %v2525_v29 = vmul.f32 %v440_v0, %v2448_v27  ;;  %v2528_v30 = vmul.f32 %v441_v5, %v2448_v27  ;;  %p2114_p9 = pneg %p2113_p5 }
  0xa5   : > { %v445_v13 = vld [vmem:[#allocation7 + $0xd0] sm:$0xff]  ;;  %v446_v14 = vld [vmem:[#allocation7 + $0xd8] sm:$0xff]  ;;  %v1093_v18 = vsel %vm1092_vm0, %v1091_v40, 0  ;;  %v447_v19 = vld [vmem:[#allocation7 + $0xe0] sm:$0xff]  ;;  %v2531_v32 = vmul.f32 %v442_v6, %v2448_v27  ;;  %v2534_v35 = vmul.f32 %v443_v7, %v2448_v27  ;;  %v2537_v36 = vmul.f32 %v444_v12, %v2448_v27  ;;  %p2120_p6 = por %p2119_p11, %p2118_p10 }
  0xa6   : > { %v448_v20 = vld [vmem:[#allocation7 + $0xe8] sm:$0xff]  ;;  %v484_v24 = vld [vmem:[#allocation7 + $0x100] sm:$0xff]  ;;  %v449_v25 = vld [vmem:[#allocation7 + $0xf0] sm:$0xff]  ;;  %v2540_v37 = vmul.f32 %v445_v13, %v2448_v27  ;;  %v2542_v41 = vand.u32 31, %v1093_v18  ;;  %v2545_v42 = vmul.f32 %v446_v14, %v2448_v27  ;;  %v2548_v43 = vmul.f32 %v447_v19, %v2448_v27 }
  0xa7   : > { %v450_v26 = vld [vmem:[#allocation7 + $0xf8] sm:$0xff]  ;;  %v485_v34 = vld [vmem:[#allocation7 + $0x108] sm:$0xff]  ;;  %v486_v38 = vld [vmem:[#allocation7 + $0x110] sm:$0xff]  ;;  %v516_v50 = vmul.f32 %v484_v24, %v2451_v31  ;;  %v2551_v51 = vshrl.u32 %v1093_v18, 5  ;;  %v2554_v52 = vmul.f32 %v448_v20, %v2448_v27  ;;  %v2557_v56 = vmul.f32 %v449_v25, %v2448_v27  ;;  %p2121_p12 = pnand %p2120_p6, %p2114_p9 }
  0xa8   : > { %v487_v39 = vld [vmem:[#allocation7 + $0x118] sm:$0xff]  ;;  %v488_v40 = vld [vmem:[#allocation7 + $0x120] sm:$0xff]  ;;  %3564 = vst [vmem:[#allocation24_spill] sm:$0xff] %v2542_v41  ;;  %v489_v44 = vld [vmem:[#allocation7 + $0x128] sm:$0xff]  ;;  %v2560_v57 = vmul.f32 %v450_v26, %v2448_v27  ;;  %v517_v0 = vmul.f32 %v485_v34, %v2451_v31  ;;  %v518_v12 = vmul.f32 %v486_v38, %v2451_v31  ;;  %v2570_v34 = vsub.s32 32, %v2542_v41 }
  0xa9   : > { %v490_v45 = vld [vmem:[#allocation7 + $0x130] sm:$0xff]  ;;  %v491_v46 = vld [vmem:[#allocation7 + $0x138] sm:$0xff]  ;;  %3565 = vst [vmem:[#allocation25_spill] sm:$0xff] %v2551_v51  ;;  %3566 = vst [vmem:[#allocation26_spill] sm:$0xff] %v2554_v52  ;;  %v519_v13 = vmul.f32 %v487_v39, %v2451_v31  ;;  %v520_v14 = vmul.f32 %v488_v40, %v2451_v31  ;;  %v521_v24 = vmul.f32 %v489_v44, %v2451_v31 }
  0xaa   : > { %3567 = vst [vmem:[#allocation27_spill] sm:$0xff] %v2557_v56  ;;  %3568 = vst [vmem:[#allocation28_spill] sm:$0xff] %v2560_v57  ;;  %v492_v58 = vld [vmem:[#allocation7 + $0x140] sm:$0xff]  ;;  %v493_v62 = vld [vmem:[#allocation7 + $0x148] sm:$0xff]  ;;  %v522_v25 = vmul.f32 %v490_v45, %v2451_v31  ;;  %v523_v26 = vmul.f32 %v491_v46, %v2451_v31  ;;  %v2576_v27 = vadd.f32 %v516_v50, %v2455_v47 }
  0xab   : > { %v494_v63 = vld [vmem:[#allocation7 + $0x150] sm:$0xff]  ;;  %v495_v5 = vld [vmem:[#allocation7 + $0x158] sm:$0xff]  ;;  %v496_v6 = vld [vmem:[#allocation7 + $0x160] sm:$0xff]  ;;  %3569 = vst [vmem:[#allocation29_spill] sm:$0xff] %v2570_v34  ;;  %v524_v38 = vmul.f32 %v492_v58, %v2451_v31  ;;  %v525_v39 = vmul.f32 %v493_v62, %v2451_v31  ;;  %v2582_v34 = vadd.f32 %v517_v0, %v2458_v48 }
  0xac   : > { %v497_v7 = vld [vmem:[#allocation7 + $0x168] sm:$0xff]  ;;  %v498_v18 = vld [vmem:[#allocation7 + $0x170] sm:$0xff]  ;;  %v499_v19 = vld [vmem:[#allocation7 + $0x178] sm:$0xff]  ;;  %v526_v40 = vmul.f32 %v494_v63, %v2451_v31  ;;  %3570 = vst [vmem:[#allocation30_spill] sm:$0xff] %v2576_v27  ;;  %v527_v46 = vmul.f32 %v495_v5, %v2451_v31  ;;  %v528_v51 = vmul.f32 %v496_v6, %v2451_v31  ;;  %v2588_v27 = vadd.f32 %v518_v12, %v2465_v53 }
  0xad   : > { %v500_v20 = vld [vmem:[#allocation7 + $0x180] sm:$0xff]  ;;  %v501_v33 = vld [vmem:[#allocation7 + $0x188] sm:$0xff]  ;;  %v502_v55 = vld [vmem:[#allocation7 + $0x190] sm:$0xff]  ;;  %v529_v41 = vmul.f32 %v497_v7, %v2451_v31  ;;  %3571 = vst [vmem:[#allocation31_spill] sm:$0xff] %v2582_v34  ;;  %v530_v63 = vmul.f32 %v498_v18, %v2451_v31  ;;  %v531_v47 = vmul.f32 %v499_v19, %v2451_v31  ;;  %v2594_v34 = vadd.f32 %v519_v13, %v2468_v54 }
  0xae   : > { %v503_v11 = vld [vmem:[#allocation7 + $0x198] sm:$0xff]  ;;  %v504_v44 = vld [vmem:[#allocation7 + $0x1a0] sm:$0xff]  ;;  %v505_v49 = vld [vmem:[#allocation7 + $0x1a8] sm:$0xff]  ;;  %v532_v50 = vmul.f32 %v500_v20, %v2451_v31  ;;  %3572 = vst [vmem:[#allocation32_spill] sm:$0xff] %v2588_v27  ;;  %v533_v7 = vmul.f32 %v501_v33, %v2451_v31  ;;  %v534_v48 = vmul.f32 %v502_v55, %v2451_v31  ;;  %v2600_v27 = vadd.f32 %v520_v14, %v2472_v59 }
  0xaf   : > { %v506_v45 = vld [vmem:[#allocation7 + $0x1b0] sm:$0xff]  ;;  %v507_v58 = vld [vmem:[#allocation7 + $0x1b8] sm:$0xff]  ;;  %v508_v57 = vld [vmem:[#allocation7 + $0x1c0] sm:$0xff]  ;;  %v535_v0 = vmul.f32 %v503_v11, %v2451_v31  ;;  %v536_v20 = vmul.f32 %v504_v44, %v2451_v31  ;;  %v537_v53 = vmul.f32 %v505_v49, %v2451_v31  ;;  %v2606_v54 = vadd.f32 %v521_v24, %v2475_v60 }
  0xb0   : > { %v509_v62 = vld [vmem:[#allocation7 + $0x1c8] sm:$0xff]  ;;  %v510_v5 = vld [vmem:[#allocation7 + $0x1d0] sm:$0xff]  ;;  %v511_v56 = vld [vmem:[#allocation7 + $0x1d8] sm:$0xff]  ;;  %v538_v12 = vmul.f32 %v506_v45, %v2451_v31  ;;  %v539_v33 = vmul.f32 %v507_v58, %v2451_v31  ;;  %v540_v55 = vmul.f32 %v508_v57, %v2451_v31  ;;  %v2612_v45 = vadd.f32 %v522_v25, %v2478_v61 }
  0xb1   : > { %v512_v6 = vld [vmem:[#allocation7 + $0x1e0] sm:$0xff]  ;;  %v513_v18 = vld [vmem:[#allocation7 + $0x1e8] sm:$0xff]  ;;  %v514_v52 = vld [vmem:[#allocation7 + $0x1f0] sm:$0xff]  ;;  %v541_v11 = vmul.f32 %v509_v62, %v2451_v31  ;;  %v542_v13 = vmul.f32 %v510_v5, %v2451_v31  ;;  %v543_v44 = vmul.f32 %v511_v56, %v2451_v31  ;;  %v2618_v58 = vadd.f32 %v523_v26, %v2481_v1 }
  0xb2   : > { %v515_v19 = vld [vmem:[#allocation7 + $0x1f8] sm:$0xff]  ;;  %v544_v49 = vmul.f32 %v512_v6, %v2451_v31  ;;  %v545_v59 = vmul.f32 %v513_v18, %v2451_v31  ;;  %v546_v14 = vmul.f32 %v514_v52, %v2451_v31  ;;  %v2621_v60 = vadd.f32 %v524_v38, %v2484_v2  ;;  %v2632_v25 = vld [vmem:[#allocation2 + $0x18] sm:$0xff]  ;;  %v581_v26 = vld [vmem:[#allocation7 + $0x200] sm:$0xff] }
  0xb3   : > { %v547_v57 = vmul.f32 %v515_v19, %v2451_v31  ;;  %v2624_v24 = vadd.f32 %v525_v39, %v2487_v3  ;;  %v2627_v56 = vadd.f32 %v526_v40, %v2490_v4  ;;  %v2630_v61 = vadd.f32 %v527_v46, %v2493_v8  ;;  %3573 = vst [vmem:[#allocation33_spill] sm:$0xff] %v2632_v25  ;;  %v582_v4 = vld [vmem:[#allocation7 + $0x208] sm:$0xff]  ;;  %v583_v38 = vld [vmem:[#allocation7 + $0x210] sm:$0xff]  ;;  %v584_v39 = vld [vmem:[#allocation7 + $0x218] sm:$0xff] }
  0xb4   : > { %v2635_v52 = vadd.f32 %v528_v51, %v2496_v9  ;;  %v2638_v1 = vadd.f32 %v529_v41, %v2499_v10  ;;  %v2641_v2 = vadd.f32 %v530_v63, %v2503_v15  ;;  %v2644_v3 = vadd.f32 %v531_v47, %v2506_v16  ;;  %v585_v15 = vld [vmem:[#allocation7 + $0x220] sm:$0xff]  ;;  %v586_v41 = vld [vmem:[#allocation7 + $0x228] sm:$0xff]  ;;  %v587_v16 = vld [vmem:[#allocation7 + $0x230] sm:$0xff] }
  0xb5   : > { %v2647_v8 = vadd.f32 %v532_v50, %v2509_v17  ;;  %v2650_v40 = vadd.f32 %v533_v7, %v2513_v21  ;;  %v2653_v9 = vadd.f32 %v534_v48, %v2516_v22  ;;  %v2656_v10 = vadd.f32 %v535_v0, %v2519_v23  ;;  %v588_v51 = vld [vmem:[#allocation7 + $0x238] sm:$0xff]  ;;  %v589_v22 = vld [vmem:[#allocation7 + $0x240] sm:$0xff]  ;;  %v590_v63 = vld [vmem:[#allocation7 + $0x248] sm:$0xff] }
  0xb6   : > { %v2659_v46 = vadd.f32 %v536_v20, %v2522_v28  ;;  %v2662_v62 = vadd.f32 %v537_v53, %v2525_v29  ;;  %v2665_v17 = vadd.f32 %v538_v12, %v2528_v30  ;;  %v2668_v21 = vadd.f32 %v539_v33, %v2531_v32  ;;  %v591_v23 = vld [vmem:[#allocation7 + $0x250] sm:$0xff]  ;;  %v592_v30 = vld [vmem:[#allocation7 + $0x258] sm:$0xff]  ;;  %v593_v5 = vld [vmem:[#allocation7 + $0x260] sm:$0xff] }
  0xb7   : > { %v2671_v47 = vadd.f32 %v540_v55, %v2534_v35  ;;  %v2674_v50 = vadd.f32 %v541_v11, %v2537_v36  ;;  %v2677_v28 = vadd.f32 %v542_v13, %v2540_v37  ;;  %v2680_v29 = vadd.f32 %v543_v44, %v2545_v42  ;;  %v594_v6 = vld [vmem:[#allocation7 + $0x268] sm:$0xff]  ;;  %v3581_v7 = vld [vmem:[#allocation26_spill] sm:$0xff]  ;;  %v3583_v35 = vld [vmem:[#allocation27_spill] sm:$0xff] }
  0xb8   : > { %3574 = vst [vmem:[#allocation34_spill] sm:$0xff] %v2665_v17  ;;  %3575 = vst [vmem:[#allocation35_spill] sm:$0xff] %v2668_v21  ;;  %v2683_v32 = vadd.f32 %v544_v49, %v2548_v43  ;;  %v2686_v48 = vadd.f32 %v545_v59, %v3581_v7  ;;  %v2689_v0 = vadd.f32 %v546_v14, %v3583_v35  ;;  %v3585_v36 = vld [vmem:[#allocation28_spill] sm:$0xff]  ;;  %v595_v37 = vld [vmem:[#allocation7 + $0x270] sm:$0xff] }
  0xb9   : > { %3576 = vst [vmem:[#allocation36_spill] sm:$0xff] %v2671_v47  ;;  %3577 = vst [vmem:[#allocation37_spill] sm:$0xff] %v2674_v50  ;;  %v2692_v18 = vadd.f32 %v547_v57, %v3585_v36  ;;  %v596_v19 = vld [vmem:[#allocation7 + $0x278] sm:$0xff]  ;;  %v597_v20 = vld [vmem:[#allocation7 + $0x280] sm:$0xff]  ;;  %v613_v33 = vmul.f32 %v581_v26, %v2632_v25  ;;  %v614_v43 = vmul.f32 %v582_v4, %v2632_v25 }
  0xba   : > { %3578 = vst [vmem:[#allocation38_spill] sm:$0xff] %v2677_v28  ;;  %3579 = vst [vmem:[#allocation39_spill] sm:$0xff] %v2680_v29  ;;  %v598_v42 = vld [vmem:[#allocation7 + $0x288] sm:$0xff]  ;;  %v599_v53 = vld [vmem:[#allocation7 + $0x290] sm:$0xff]  ;;  %v615_v55 = vmul.f32 %v583_v38, %v2632_v25  ;;  %v616_v11 = vmul.f32 %v584_v39, %v2632_v25  ;;  %v617_v59 = vmul.f32 %v585_v15, %v2632_v25 }
  0xbb   : > { %3580 = vst [vmem:[#allocation40_spill] sm:$0xff] %v2683_v32  ;;  %3582 = vst [vmem:[#allocation26_spill] sm:$0xff] %v2686_v48  ;;  %v600_v12 = vld [vmem:[#allocation7 + $0x298] sm:$0xff]  ;;  %v601_v13 = vld [vmem:[#allocation7 + $0x2a0] sm:$0xff]  ;;  %v618_v14 = vmul.f32 %v586_v41, %v2632_v25  ;;  %v619_v57 = vmul.f32 %v587_v16, %v2632_v25  ;;  %v620_v7 = vmul.f32 %v588_v51, %v2632_v25 }
  0xbc   : > { %3584 = vst [vmem:[#allocation27_spill] sm:$0xff] %v2689_v0  ;;  %3586 = vst [vmem:[#allocation28_spill] sm:$0xff] %v2692_v18  ;;  %v602_v44 = vld [vmem:[#allocation7 + $0x2a8] sm:$0xff]  ;;  %v603_v49 = vld [vmem:[#allocation7 + $0x2b0] sm:$0xff]  ;;  %v621_v4 = vmul.f32 %v589_v22, %v2632_v25  ;;  %v622_v38 = vmul.f32 %v590_v63, %v2632_v25  ;;  %v623_v39 = vmul.f32 %v591_v23, %v2632_v25 }
  0xbd   : > { %v604_v35 = vld [vmem:[#allocation7 + $0x2b8] sm:$0xff]  ;;  %v605_v36 = vld [vmem:[#allocation7 + $0x2c0] sm:$0xff]  ;;  %v606_v26 = vld [vmem:[#allocation7 + $0x2c8] sm:$0xff]  ;;  %v624_v31 = vmul.f32 %v592_v30, %v2632_v25  ;;  %v625_v41 = vmul.f32 %v593_v5, %v2632_v25  ;;  %v626_v16 = vmul.f32 %v594_v6, %v2632_v25  ;;  %v627_v51 = vmul.f32 %v595_v37, %v2632_v25 }
  0xbe   : > { %v607_v18 = vld [vmem:[#allocation7 + $0x2d0] sm:$0xff]  ;;  %v608_v0 = vld [vmem:[#allocation7 + $0x2d8] sm:$0xff]  ;;  %v609_v15 = vld [vmem:[#allocation7 + $0x2e0] sm:$0xff]  ;;  %v628_v48 = vmul.f32 %v596_v19, %v2632_v25  ;;  %v629_v63 = vmul.f32 %v597_v20, %v2632_v25  ;;  %v630_v23 = vmul.f32 %v598_v42, %v2632_v25  ;;  %v631_v30 = vmul.f32 %v599_v53, %v2632_v25 }
  0xbf   : > { %v610_v32 = vld [vmem:[#allocation7 + $0x2e8] sm:$0xff]  ;;  %v611_v29 = vld [vmem:[#allocation7 + $0x2f0] sm:$0xff]  ;;  %v612_v22 = vld [vmem:[#allocation7 + $0x2f8] sm:$0xff]  ;;  %v632_v28 = vmul.f32 %v600_v12, %v2632_v25  ;;  %v633_v50 = vmul.f32 %v601_v13, %v2632_v25  ;;  %v634_v5 = vmul.f32 %v602_v44, %v2632_v25  ;;  %v635_v6 = vmul.f32 %v603_v49, %v2632_v25 }
  0xc0   : > { %v636_v37 = vmul.f32 %v604_v35, %v2632_v25  ;;  %v637_v19 = vmul.f32 %v605_v36, %v2632_v25  ;;  %v638_v47 = vmul.f32 %v606_v26, %v2632_v25  ;;  %v639_v20 = vmul.f32 %v607_v18, %v2632_v25  ;;  %v3587_v21 = vld [vmem:[#allocation30_spill] sm:$0xff]  ;;  %v3588_v35 = vld [vmem:[#allocation31_spill] sm:$0xff]  ;;  %v3589_v36 = vld [vmem:[#allocation32_spill] sm:$0xff] }
  0xc1   : > { %v640_v42 = vmul.f32 %v608_v0, %v2632_v25  ;;  %v641_v53 = vmul.f32 %v609_v15, %v2632_v25  ;;  %v642_v12 = vmul.f32 %v610_v32, %v2632_v25  ;;  %v643_v13 = vmul.f32 %v611_v29, %v2632_v25 }
  0xc2   : > { %v644_v44 = vmul.f32 %v612_v22, %v2632_v25  ;;  %v2727_v49 = vadd.f32 %v613_v33, %v3587_v21  ;;  %v2730_v17 = vadd.f32 %v614_v43, %v3588_v35  ;;  %v2733_v26 = vadd.f32 %v615_v55, %v3589_v36  ;;  %v678_v55 = vld [vmem:[#allocation7 + $0x300] sm:$0xff]  ;;  %v689_v22 = vld [vmem:[#allocation7 + $0x358] sm:$0xff] }
  0xc3   : > { %v2736_v18 = vadd.f32 %v616_v11, %v2594_v34  ;;  %v2739_v0 = vadd.f32 %v617_v59, %v2600_v27  ;;  %v2742_v32 = vadd.f32 %v618_v14, %v2606_v54  ;;  %v2745_v29 = vadd.f32 %v619_v57, %v2612_v45  ;;  %v2762_v54 = vld [vmem:[#allocation2 + $0x8] sm:$0xff]  ;;  %v680_v11 = vld [vmem:[#allocation7 + $0x310] sm:$0xff]  ;;  %v681_v59 = vld [vmem:[#allocation7 + $0x318] sm:$0xff] }
  0xc4   : > { %v2748_v21 = vadd.f32 %v620_v7, %v2618_v58  ;;  %v2751_v33 = vadd.f32 %v621_v4, %v2621_v60  ;;  %v2754_v43 = vadd.f32 %v622_v38, %v2624_v24  ;;  %v2757_v34 = vadd.f32 %v623_v39, %v2627_v56  ;;  %v679_v56 = vld [vmem:[#allocation7 + $0x308] sm:$0xff] }
  0xc5   : > { %v2760_v27 = vadd.f32 %v624_v31, %v2630_v61  ;;  %v2765_v45 = vadd.f32 %v625_v41, %v2635_v52  ;;  %v2768_v58 = vadd.f32 %v626_v16, %v2638_v1  ;;  %v2771_v60 = vadd.f32 %v627_v51, %v2641_v2  ;;  %v682_v2 = vld [vmem:[#allocation7 + $0x320] sm:$0xff]  ;;  %v683_v14 = vld [vmem:[#allocation7 + $0x328] sm:$0xff]  ;;  %v3597_v41 = vld [vmem:[#allocation37_spill] sm:$0xff] }
  0xc6   : > { %v2774_v24 = vadd.f32 %v628_v48, %v2644_v3  ;;  %v2777_v31 = vadd.f32 %v629_v63, %v2647_v8  ;;  %v2780_v61 = vadd.f32 %v630_v23, %v2650_v40  ;;  %v2783_v52 = vadd.f32 %v631_v30, %v2653_v9  ;;  %v684_v3 = vld [vmem:[#allocation7 + $0x330] sm:$0xff]  ;;  %v685_v48 = vld [vmem:[#allocation7 + $0x338] sm:$0xff]  ;;  %v3593_v40 = vld [vmem:[#allocation35_spill] sm:$0xff] }
  0xc7   : > { %v2786_v1 = vadd.f32 %v632_v28, %v2656_v10  ;;  %v2789_v57 = vadd.f32 %v633_v50, %v2659_v46  ;;  %v2792_v7 = vadd.f32 %v634_v5, %v2662_v62  ;;  %v3591_v8 = vld [vmem:[#allocation34_spill] sm:$0xff]  ;;  %v2798_v38 = vadd.f32 %v636_v37, %v3593_v40  ;;  %v686_v9 = vld [vmem:[#allocation7 + $0x340] sm:$0xff]  ;;  %v687_v39 = vld [vmem:[#allocation7 + $0x348] sm:$0xff] }
  0xc8   : > { %v2795_v4 = vadd.f32 %v635_v6, %v3591_v8  ;;  %v688_v10 = vld [vmem:[#allocation7 + $0x350] sm:$0xff]  ;;  %v3595_v28 = vld [vmem:[#allocation36_spill] sm:$0xff]  ;;  %v2804_v16 = vadd.f32 %v638_v47, %v3597_v41  ;;  %v3599_v46 = vld [vmem:[#allocation38_spill] sm:$0xff]  ;;  %v717_v25 = vmul.f32 %v685_v48, %v2762_v54 }
  0xc9   : > { %3590 = vst [vmem:[#allocation30_spill] sm:$0xff] %v2792_v7  ;;  %3594 = vst [vmem:[#allocation32_spill] sm:$0xff] %v2798_v38  ;;  %v2801_v15 = vadd.f32 %v637_v19, %v3595_v28  ;;  %v2807_v50 = vadd.f32 %v639_v20, %v3599_v46  ;;  %v3601_v62 = vld [vmem:[#allocation39_spill] sm:$0xff]  ;;  %v691_v23 = vld [vmem:[#allocation7 + $0x368] sm:$0xff]  ;;  %v710_v46 = vmul.f32 %v678_v55, %v2762_v54 }
  0xca   : > { %3592 = vst [vmem:[#allocation31_spill] sm:$0xff] %v2795_v4  ;;  %3598 = vst [vmem:[#allocation35_spill] sm:$0xff] %v2804_v16  ;;  %v2810_v51 = vadd.f32 %v640_v42, %v3601_v62  ;;  %v690_v63 = vld [vmem:[#allocation7 + $0x360] sm:$0xff]  ;;  %v3603_v30 = vld [vmem:[#allocation40_spill] sm:$0xff]  ;;  %v712_v62 = vmul.f32 %v680_v11, %v2762_v54  ;;  %v719_v11 = vmul.f32 %v687_v39, %v2762_v54 }
  0xcb   : > { %3596 = vst [vmem:[#allocation34_spill] sm:$0xff] %v2801_v15  ;;  %3600 = vst [vmem:[#allocation36_spill] sm:$0xff] %v2807_v50  ;;  %v2813_v5 = vadd.f32 %v641_v53, %v3603_v30  ;;  %v3605_v6 = vld [vmem:[#allocation26_spill] sm:$0xff]  ;;  %v3607_v19 = vld [vmem:[#allocation27_spill] sm:$0xff]  ;;  %v711_v53 = vmul.f32 %v679_v56, %v2762_v54  ;;  %v718_v56 = vmul.f32 %v686_v9, %v2762_v54 }
  0xcc   : > { %3602 = vst [vmem:[#allocation37_spill] sm:$0xff] %v2810_v51  ;;  %v2816_v37 = vadd.f32 %v642_v12, %v3605_v6  ;;  %v2819_v35 = vadd.f32 %v643_v13, %v3607_v19  ;;  %v3609_v47 = vld [vmem:[#allocation28_spill] sm:$0xff]  ;;  %v692_v20 = vld [vmem:[#allocation7 + $0x370] sm:$0xff]  ;;  %v693_v8 = vld [vmem:[#allocation7 + $0x378] sm:$0xff]  ;;  %v713_v12 = vmul.f32 %v681_v59, %v2762_v54  ;;  %v715_v19 = vmul.f32 %v683_v14, %v2762_v54 }
  0xcd   : > { %3604 = vst [vmem:[#allocation38_spill] sm:$0xff] %v2813_v5  ;;  %v2822_v36 = vadd.f32 %v644_v44, %v3609_v47  ;;  %v694_v40 = vld [vmem:[#allocation7 + $0x380] sm:$0xff]  ;;  %v695_v42 = vld [vmem:[#allocation7 + $0x388] sm:$0xff]  ;;  %v696_v28 = vld [vmem:[#allocation7 + $0x390] sm:$0xff]  ;;  %v714_v44 = vmul.f32 %v682_v2, %v2762_v54  ;;  %v716_v47 = vmul.f32 %v684_v3, %v2762_v54  ;;  %v720_v59 = vmul.f32 %v688_v10, %v2762_v54 }
  0xce   : > { %3606 = vst [vmem:[#allocation39_spill] sm:$0xff] %v2816_v37  ;;  %3608 = vst [vmem:[#allocation40_spill] sm:$0xff] %v2819_v35  ;;  %v697_v41 = vld [vmem:[#allocation7 + $0x398] sm:$0xff]  ;;  %v698_v30 = vld [vmem:[#allocation7 + $0x3a0] sm:$0xff]  ;;  %v721_v37 = vmul.f32 %v689_v22, %v2762_v54  ;;  %v722_v14 = vmul.f32 %v690_v63, %v2762_v54  ;;  %v723_v3 = vmul.f32 %v691_v23, %v2762_v54 }
  0xcf   : > { %3610 = vst [vmem:[#allocation26_spill] sm:$0xff] %v2822_v36  ;;  %v699_v13 = vld [vmem:[#allocation7 + $0x3a8] sm:$0xff]  ;;  %v700_v6 = vld [vmem:[#allocation7 + $0x3b0] sm:$0xff]  ;;  %v701_v36 = vld [vmem:[#allocation7 + $0x3b8] sm:$0xff]  ;;  %v724_v48 = vmul.f32 %v692_v20, %v2762_v54  ;;  %v725_v50 = vmul.f32 %v693_v8, %v2762_v54  ;;  %v726_v39 = vmul.f32 %v694_v40, %v2762_v54  ;;  %v727_v10 = vmul.f32 %v695_v42, %v2762_v54 }
  0xd0   : > { %v702_v35 = vld [vmem:[#allocation7 + $0x3c0] sm:$0xff]  ;;  %v703_v55 = vld [vmem:[#allocation7 + $0x3c8] sm:$0xff]  ;;  %v704_v5 = vld [vmem:[#allocation7 + $0x3d0] sm:$0xff]  ;;  %v728_v22 = vmul.f32 %v696_v28, %v2762_v54  ;;  %v729_v38 = vmul.f32 %v697_v41, %v2762_v54  ;;  %v730_v4 = vmul.f32 %v698_v30, %v2762_v54  ;;  %v731_v63 = vmul.f32 %v699_v13, %v2762_v54 }
  0xd1   : > { %v705_v51 = vld [vmem:[#allocation7 + $0x3d8] sm:$0xff]  ;;  %v706_v2 = vld [vmem:[#allocation7 + $0x3e0] sm:$0xff]  ;;  %v707_v16 = vld [vmem:[#allocation7 + $0x3e8] sm:$0xff]  ;;  %v732_v23 = vmul.f32 %v700_v6, %v2762_v54  ;;  %v733_v20 = vmul.f32 %v701_v36, %v2762_v54  ;;  %v734_v8 = vmul.f32 %v702_v35, %v2762_v54  ;;  %v735_v7 = vmul.f32 %v703_v55, %v2762_v54 }
  0xd2   : > { %v708_v15 = vld [vmem:[#allocation7 + $0x3f0] sm:$0xff]  ;;  %v709_v9 = vld [vmem:[#allocation7 + $0x3f8] sm:$0xff]  ;;  %v736_v40 = vmul.f32 %v704_v5, %v2762_v54  ;;  %v737_v42 = vmul.f32 %v705_v51, %v2762_v54  ;;  %v738_v28 = vmul.f32 %v706_v2, %v2762_v54  ;;  %v739_v41 = vmul.f32 %v707_v16, %v2762_v54 }
  0xd3   : > { %v740_v30 = vmul.f32 %v708_v15, %v2762_v54  ;;  %v741_v13 = vmul.f32 %v709_v9, %v2762_v54  ;;  %v742_v6 = vadd.f32 %v710_v46, %v2727_v49  ;;  %v743_v36 = vadd.f32 %v711_v53, %v2730_v17  ;;  %v774_v46 = vld [vmem:[#allocation9] sm:$0xff]  ;;  %v776_v53 = vld [vmem:[#allocation9 + $0x10] sm:$0xff] }
  0xd4   : > { %v744_v35 = vadd.f32 %v712_v62, %v2733_v26  ;;  %v745_v55 = vadd.f32 %v713_v12, %v2736_v18  ;;  %v746_v5 = vadd.f32 %v714_v44, %v2739_v0  ;;  %v747_v51 = vadd.f32 %v715_v19, %v2742_v32  ;;  %v3612_v62 = vld [vmem:[#allocation31_spill] sm:$0xff]  ;;  %v780_v44 = vld [vmem:[#allocation9 + $0x30] sm:$0xff]  ;;  %v781_v19 = vld [vmem:[#allocation9 + $0x38] sm:$0xff] }
  0xd5   : > { %v748_v2 = vadd.f32 %v716_v47, %v2745_v29  ;;  %v749_v16 = vadd.f32 %v717_v25, %v2748_v21  ;;  %v750_v15 = vadd.f32 %v718_v56, %v2751_v33  ;;  %v751_v9 = vadd.f32 %v719_v11, %v2754_v43  ;;  %v775_v29 = vld [vmem:[#allocation9 + $0x8] sm:$0xff]  ;;  %v3614_v47 = vld [vmem:[#allocation34_spill] sm:$0xff]  ;;  %v3615_v56 = vld [vmem:[#allocation35_spill] sm:$0xff] }
  0xd6   : > { %v752_v49 = vadd.f32 %v720_v59, %v2757_v34  ;;  %v753_v17 = vadd.f32 %v721_v37, %v2760_v27  ;;  %v754_v26 = vadd.f32 %v722_v14, %v2765_v45  ;;  %v755_v18 = vadd.f32 %v723_v3, %v2768_v58  ;;  %v777_v34 = vld [vmem:[#allocation9 + $0x18] sm:$0xff]  ;;  %v778_v27 = vld [vmem:[#allocation9 + $0x20] sm:$0xff]  ;;  %v779_v45 = vld [vmem:[#allocation9 + $0x28] sm:$0xff] }
  0xd7   : > { %v756_v0 = vadd.f32 %v724_v48, %v2771_v60  ;;  %v757_v32 = vadd.f32 %v725_v50, %v2774_v24  ;;  %v758_v25 = vadd.f32 %v726_v39, %v2777_v31  ;;  %v759_v21 = vadd.f32 %v727_v10, %v2780_v61  ;;  %v3611_v37 = vld [vmem:[#allocation30_spill] sm:$0xff]  ;;  %v3613_v50 = vld [vmem:[#allocation32_spill] sm:$0xff]  ;;  %v782_v31 = vld [vmem:[#allocation9 + $0x40] sm:$0xff] }
  0xd8   : > { %v760_v33 = vadd.f32 %v728_v22, %v2783_v52  ;;  %v761_v43 = vadd.f32 %v729_v38, %v2786_v1  ;;  %v762_v58 = vadd.f32 %v730_v4, %v2789_v57  ;;  %v763_v60 = vadd.f32 %v731_v63, %v3611_v37  ;;  %v3616_v11 = vld [vmem:[#allocation36_spill] sm:$0xff]  ;;  %v3617_v38 = vld [vmem:[#allocation37_spill] sm:$0xff]  ;;  %v785_v57 = vld [vmem:[#allocation9 + $0x58] sm:$0xff] }
  0xd9   : > { %v764_v24 = vadd.f32 %v732_v23, %v3612_v62  ;;  %v765_v12 = vadd.f32 %v733_v20, %v3613_v50  ;;  %v766_v61 = vadd.f32 %v734_v8, %v3614_v47  ;;  %v767_v52 = vadd.f32 %v735_v7, %v3615_v56  ;;  %v783_v14 = vld [vmem:[#allocation9 + $0x48] sm:$0xff]  ;;  %v784_v3 = vld [vmem:[#allocation9 + $0x50] sm:$0xff]  ;;  %v3618_v4 = vld [vmem:[#allocation38_spill] sm:$0xff] }
  0xda   : > { %v768_v1 = vadd.f32 %v736_v40, %v3616_v11  ;;  %v769_v59 = vadd.f32 %v737_v42, %v3617_v38  ;;  %v770_v48 = vadd.f32 %v738_v28, %v3618_v4  ;;  %v3619_v39 = vld [vmem:[#allocation39_spill] sm:$0xff]  ;;  %v3620_v22 = vld [vmem:[#allocation40_spill] sm:$0xff]  ;;  %v3621_v23 = vld [vmem:[#allocation26_spill] sm:$0xff]  ;;  %v2888_v40 = vadd.f32 %v774_v46, %v742_v6 }
  0xdb   : > { %v771_v10 = vadd.f32 %v739_v41, %v3619_v39  ;;  %v772_v63 = vadd.f32 %v740_v30, %v3620_v22  ;;  %v773_v20 = vadd.f32 %v741_v13, %v3621_v23  ;;  %v786_v37 = vld [vmem:[#allocation9 + $0x60] sm:$0xff]  ;;  %v787_v62 = vld [vmem:[#allocation9 + $0x68] sm:$0xff]  ;;  %v788_v8 = vld [vmem:[#allocation9 + $0x70] sm:$0xff]  ;;  %v2890_v42 = vadd.f32 %v775_v29, %v743_v36 }
  0xdc   : > { %v789_v50 = vld [vmem:[#allocation9 + $0x78] sm:$0xff]  ;;  %v790_v7 = vld [vmem:[#allocation9 + $0x80] sm:$0xff]  ;;  %v791_v47 = vld [vmem:[#allocation9 + $0x88] sm:$0xff]  ;;  %v2892_v56 = vadd.f32 %v776_v53, %v744_v35  ;;  %v2894_v11 = vadd.f32 %v777_v34, %v745_v55  ;;  %v2896_v30 = vadd.f32 %v778_v27, %v746_v5  ;;  %v2898_v13 = vadd.f32 %v779_v45, %v747_v51 }
  0xdd   : > { %v792_v28 = vld [vmem:[#allocation9 + $0x90] sm:$0xff]  ;;  %v793_v41 = vld [vmem:[#allocation9 + $0x98] sm:$0xff]  ;;  %v794_v38 = vld [vmem:[#allocation9 + $0xa0] sm:$0xff]  ;;  %v2900_v4 = vadd.f32 %v780_v44, %v748_v2  ;;  %v2902_v39 = vadd.f32 %v781_v19, %v749_v16  ;;  %v2904_v36 = vadd.f32 %v782_v31, %v750_v15  ;;  %v2906_v35 = vadd.f32 %v783_v14, %v751_v9 }
  0xde   : > { %v795_v22 = vld [vmem:[#allocation9 + $0xa8] sm:$0xff]  ;;  %v796_v6 = vld [vmem:[#allocation9 + $0xb0] sm:$0xff]  ;;  %v797_v46 = vld [vmem:[#allocation9 + $0xb8] sm:$0xff]  ;;  %v2908_v55 = vadd.f32 %v784_v3, %v752_v49  ;;  %v2910_v29 = vadd.f32 %v785_v57, %v753_v17  ;;  %v2912_v51 = vadd.f32 %v786_v37, %v754_v26  ;;  %v2914_v2 = vadd.f32 %v787_v62, %v755_v18 }
  0xdf   : > { %v798_v53 = vld [vmem:[#allocation9 + $0xc0] sm:$0xff]  ;;  %v799_v5 = vld [vmem:[#allocation9 + $0xc8] sm:$0xff]  ;;  %v800_v34 = vld [vmem:[#allocation9 + $0xd0] sm:$0xff]  ;;  %v2916_v16 = vadd.f32 %v788_v8, %v756_v0  ;;  %v2918_v27 = vadd.f32 %v789_v50, %v757_v32  ;;  %v2920_v9 = vadd.f32 %v790_v7, %v758_v25  ;;  %v2922_v49 = vadd.f32 %v791_v47, %v759_v21 }
  0xe0   : > { %v801_v45 = vld [vmem:[#allocation9 + $0xd8] sm:$0xff]  ;;  %v802_v15 = vld [vmem:[#allocation9 + $0xe0] sm:$0xff]  ;;  %v803_v44 = vld [vmem:[#allocation9 + $0xe8] sm:$0xff]  ;;  %v2924_v17 = vadd.f32 %v792_v28, %v760_v33  ;;  %v2926_v19 = vadd.f32 %v793_v41, %v761_v43  ;;  %v2928_v14 = vadd.f32 %v794_v38, %v762_v58  ;;  %v2930_v18 = vadd.f32 %v795_v22, %v763_v60 }
  0xe1   : > { %3622 = vst [vmem:[#allocation27_spill] sm:$0xff] %v2922_v49  ;;  %v804_v31 = vld [vmem:[#allocation9 + $0xf0] sm:$0xff]  ;;  %v805_v26 = vld [vmem:[#allocation9 + $0xf8] sm:$0xff]  ;;  %v2932_v0 = vadd.f32 %v796_v6, %v764_v24  ;;  %v2934_v32 = vadd.f32 %v797_v46, %v765_v12  ;;  %v2936_v3 = vadd.f32 %v798_v53, %v766_v61  ;;  %v2938_v25 = vadd.f32 %v799_v5, %v767_v52  ;;  %v870_v24 = vld [vmem:[#allocation10] sm:$0xff] }
  0xe2   : > { %v3527_v21 = vmax.f32 %v2888_v40, 0.0  ;;  %v3526_v33 = vmax.f32 %v2890_v42, 0.0  ;;  %v2942_v43 = vadd.f32 %v800_v34, %v768_v1  ;;  %v2944_v57 = vadd.f32 %v801_v45, %v769_v59  ;;  %v871_v23 = vld [vmem:[#allocation10 + $0x8] sm:$0xff]  ;;  %v873_v38 = vld [vmem:[#allocation10 + $0x18] sm:$0xff]  ;;  %v878_v46 = vld [vmem:[#allocation10 + $0x40] sm:$0xff] }
  0xe3   : > { %v2946_v58 = vadd.f32 %v802_v15, %v770_v48  ;;  %v2948_v60 = vadd.f32 %v803_v44, %v771_v10  ;;  %v2950_v12 = vadd.f32 %v804_v31, %v772_v63  ;;  %v2952_v61 = vadd.f32 %v805_v26, %v773_v20  ;;  %v872_v10 = vld [vmem:[#allocation10 + $0x10] sm:$0xff]  ;;  %v874_v44 = vld [vmem:[#allocation10 + $0x20] sm:$0xff]  ;;  %v875_v31 = vld [vmem:[#allocation10 + $0x28] sm:$0xff] }
  0xe4   : > { %v3524_v52 = vmax.f32 %v2892_v56, 0.0  ;;  %v3525_v37 = vmax.f32 %v2894_v11, 0.0  ;;  %v3528_v62 = vmax.f32 %v2896_v30, 0.0  ;;  %v3529_v1 = vmax.f32 %v2898_v13, 0.0  ;;  %v877_v6 = vld [vmem:[#allocation10 + $0x38] sm:$0xff]  ;;  %v879_v22 = vld [vmem:[#allocation10 + $0x48] sm:$0xff] }
  0xe5   : > { %3623 = vst [vmem:[#allocation28_spill] sm:$0xff] %v2950_v12  ;;  %3624 = vst [vmem:[#allocation30_spill] sm:$0xff] %v2952_v61  ;;  %v3532_v59 = vmax.f32 %v2900_v4, 0.0  ;;  %v3533_v48 = vmax.f32 %v2902_v39, 0.0  ;;  %v3534_v8 = vmax.f32 %v2904_v36, 0.0  ;;  %v3536_v63 = vmax.f32 %v2906_v35, 0.0 }
  0xe6   : > { %v902_v20 = vmul.f32 %v870_v24, %v3527_v21  ;;  %v903_v50 = vmul.f32 %v871_v23, %v3526_v33  ;;  %v3535_v7 = vmax.f32 %v2908_v55, 0.0  ;;  %v904_v53 = vmul.f32 %v872_v10, %v3524_v52  ;;  %v876_v23 = vld [vmem:[#allocation10 + $0x30] sm:$0xff]  ;;  %v881_v28 = vld [vmem:[#allocation10 + $0x58] sm:$0xff]  ;;  %v882_v15 = vld [vmem:[#allocation10 + $0x60] sm:$0xff] }
  0xe7   : > { %v905_v10 = vmul.f32 %v873_v38, %v3525_v37  ;;  %v880_v41 = vld [vmem:[#allocation10 + $0x50] sm:$0xff]  ;;  %v906_v47 = vmul.f32 %v874_v44, %v3528_v62  ;;  %v883_v37 = vld [vmem:[#allocation10 + $0x68] sm:$0xff]  ;;  %v907_v26 = vmul.f32 %v875_v31, %v3529_v1  ;;  %v885_v24 = vld [vmem:[#allocation10 + $0x78] sm:$0xff]  ;;  %v908_v44 = vmul.f32 %v876_v23, %v3532_v59 }
  0xe8   : > { %v934_v52 = vadd.f32 %v903_v50, %v902_v20  ;;  %v968_v20 = vld [vmem:[#allocation10 + $0x100] sm:$0xff]  ;;  %v969_v50 = vld [vmem:[#allocation10 + $0x108] sm:$0xff]  ;;  %v884_v33 = vld [vmem:[#allocation10 + $0x70] sm:$0xff]  ;;  %v911_v62 = vmul.f32 %v879_v22, %v3536_v63  ;;  %v3006_v31 = vmul.f32 %v880_v41, %v3535_v7  ;;  %v3625_v23 = vmax.f32 %v2888_v40, 0.0 }
  0xe9   : > { %v886_v21 = vld [vmem:[#allocation10 + $0x80] sm:$0xff]  ;;  %v970_v5 = vld [vmem:[#allocation10 + $0x110] sm:$0xff]  ;;  %v887_v45 = vld [vmem:[#allocation10 + $0x88] sm:$0xff]  ;;  %v3629_v22 = vmax.f32 %v2914_v2, 0.0 }
  0xea   : > { %v935_v38 = vadd.f32 %v934_v52, %v904_v53  ;;  %v909_v52 = vmul.f32 %v877_v6, %v3533_v48  ;;  %v910_v53 = vmul.f32 %v878_v46, %v3534_v8  ;;  %v971_v1 = vld [vmem:[#allocation10 + $0x118] sm:$0xff]  ;;  %v972_v61 = vld [vmem:[#allocation10 + $0x120] sm:$0xff]  ;;  %v1000_v59 = vmul.f32 %v968_v20, %v3625_v23  ;;  %v973_v63 = vld [vmem:[#allocation10 + $0x128] sm:$0xff] }
  0xeb   : > { %v3626_v6 = vmax.f32 %v2890_v42, 0.0  ;;  %v3627_v46 = vmax.f32 %v2910_v29, 0.0  ;;  %v3022_v41 = vmul.f32 %v883_v37, %v3629_v22  ;;  %v974_v12 = vld [vmem:[#allocation10 + $0x130] sm:$0xff]  ;;  %v975_v40 = vld [vmem:[#allocation10 + $0x138] sm:$0xff]  ;;  %v3630_v20 = vmax.f32 %v2916_v16, 0.0 }
  0xec   : > { %v936_v34 = vadd.f32 %v935_v38, %v905_v10  ;;  %v3628_v38 = vmax.f32 %v2912_v51, 0.0  ;;  %v3632_v23 = vmax.f32 %v2920_v9, 0.0  ;;  %v3633_v37 = vmax.f32 %v2892_v56, 0.0 }
  0xed   : > { %v1001_v48 = vmul.f32 %v969_v50, %v3626_v6  ;;  %v3014_v10 = vmul.f32 %v881_v28, %v3627_v46  ;;  %v3026_v42 = vmul.f32 %v884_v33, %v3630_v20  ;;  %v3631_v50 = vmax.f32 %v2918_v27, 0.0  ;;  %v976_v6 = vld [vmem:[#allocation10 + $0x140] sm:$0xff] }
  0xee   : > { %v3018_v8 = vmul.f32 %v882_v15, %v3628_v38  ;;  %v937_v7 = vadd.f32 %v936_v34, %v906_v47  ;;  %v3034_v15 = vmul.f32 %v886_v21, %v3632_v23  ;;  %v1002_v46 = vmul.f32 %v970_v5, %v3633_v37  ;;  %v977_v38 = vld [vmem:[#allocation10 + $0x148] sm:$0xff] }
  0xef   : > { %v3030_v28 = vmul.f32 %v885_v24, %v3631_v50  ;;  %v3634_v47 = vmax.f32 %v2922_v49, 0.0  ;;  %v3635_v22 = vmax.f32 %v2894_v11, 0.0  ;;  %v3636_v20 = vmax.f32 %v2896_v30, 0.0  ;;  %v3641_v11 = vld [vmem:[#allocation33_spill] sm:$0xff] }
  0xf0   : > { %v938_v33 = vadd.f32 %v937_v7, %v907_v26  ;;  %v3637_v21 = vmax.f32 %v2898_v13, 0.0  ;;  %v3638_v56 = vmax.f32 %v2900_v4, 0.0  ;;  %v3639_v37 = vmax.f32 %v2902_v39, 0.0  ;;  %v1548_v4 = vld [vmem:[%s2438_s29] sm:$0xff] }
  0xf1   : > { %v3040_v34 = vmul.f32 %v887_v45, %v3634_v47  ;;  %v1003_v24 = vmul.f32 %v971_v1, %v3635_v22  ;;  %v1004_v50 = vmul.f32 %v972_v61, %v3636_v20  ;;  %v1032_v45 = vadd.f32 %v1001_v48, %v1000_v59  ;;  %v3643_v39 = vld [vmem:[#allocation29_spill] sm:$0xff]  ;;  %v3644_v48 = vld [vmem:[#allocation24_spill] sm:$0xff] }
  0xf2   : > { %v1005_v23 = vmul.f32 %v973_v63, %v3637_v21  ;;  %v1006_v5 = vmul.f32 %v974_v12, %v3638_v56  ;;  %v1007_v49 = vmul.f32 %v975_v40, %v3639_v37  ;;  %v939_v47 = vadd.f32 %v938_v33, %v908_v44  ;;  %v1771_v12 = vld [vmem:[%s2438_s29 + $0x8] sm:$0xff]  ;;  %v3068_v40 = vld [vmem:[#allocation2 + $0x10] sm:$0xff] }
  0xf3   : > { %v3640_v7 = vmax.f32 %v2904_v36, 0.0  ;;  %v1546_v1 = vmul.f32 0.05, %v3641_v11  ;;  %v1550_v30 = vmul.f32 0.05, %v2762_v54  ;;  %v3642_v61 = vmax.f32 %v2906_v35, 0.0 }
  0xf4   : > { %v1033_v63 = vadd.f32 %v1032_v45, %v1002_v46  ;;  %v2214_v22 = vmov 683565275   ;;  %v940_v44 = vadd.f32 %v939_v47, %v909_v52  ;;  %v3071_v54 = vld [vmem:[#allocation2] sm:$0xff]  ;;  %v3540_v33 = vmov 2475754826   ;;  %v978_v11 = vld [vmem:[#allocation10 + $0x150] sm:$0xff] }
  0xf5   : > { %v3054_v26 = vmul.f32 %v976_v6, %v3640_v7  ;;  %v3060_v13 = vmul.f32 %v977_v38, %v3642_v61  ;;  %v1097_v59 = vshrl.u32 %v2214_v22, %v3643_v39  ;;  %v1098_v36 = vshll.u32 %v2214_v22, %v3644_v48 }
  0xf6   : > { %v1547_v6 = vadd.f32 %v3068_v40, %v1546_v1  ;;  %v1551_v35 = vadd.f32 %v3071_v54, %v1550_v30  ;;  %v1099_v46 = vshrl.u32 %v3540_v33, %v3643_v39  ;;  %v1034_v38 = vadd.f32 %v1033_v63, %v1003_v24 }
  0xf7   : > { %v1101_v20 = vshll.u32 %v3540_v33, %v3644_v48  ;;  %v3542_v21 = vmov 2131351028   ;;  %v941_v37 = vadd.f32 %v940_v44, %v910_v53  ;;  %v2217_v24 = vmov 2102212464  }
  0xf8   : > { %v1102_v52 = vshrl.u32 %v3542_v21, %v3643_v39  ;;  %v1104_v56 = vshll.u32 %v3542_v21, %v3644_v48  ;;  %v1549_v45 = vadd.f32 %v1548_v4, %v1547_v6  ;;  %v1554_v47 = vadd.f32 %v1771_v12, %v1551_v35  ;;  %v3645_v21 = vld [vmem:[#allocation25_spill] sm:$0xff] }
  0xf9   : > { %v1100_v7 = vor.u32 %v1099_v46, %v1098_v36  ;;  %v1035_v1 = vadd.f32 %v1034_v38, %v1004_v50  ;;  %v1105_v61 = vshrl.u32 %v2217_v24, %v3643_v39  ;;  %v1107_v63 = vshll.u32 %v2217_v24, %v3644_v48 }
  0xfa   : > { %v1103_v30 = vor.u32 %v1102_v52, %v1101_v20  ;;  %v942_v33 = vadd.f32 %v941_v37, %v911_v62  ;;  %1775 = vst [vmem:[%s2445_s20 + $0x10] sm:$0xff] %v1549_v45  ;;  %1565 = vst [vmem:[#allocation2 + $0x10] sm:$0xff] %v1549_v45  ;;  %vm1113_vm1 = vcmp.lt.s32.totalorder %v3645_v21, 1  ;;  %v2218_v12 = vmov 920167782  }
  0xfb   : > { %1776 = vst [vmem:[%s2445_s20 + $0x18] sm:$0xff] %v1554_v47  ;;  %1566 = vst [vmem:[#allocation2] sm:$0xff] %v1554_v47  ;;  %v1036_v53 = vadd.f32 %v1035_v1, %v1005_v23  ;;  %v1106_v4 = vor.u32 %v1105_v61, %v1104_v56  ;;  %v1108_v50 = vshrl.u32 %v2218_v12, %v3643_v39  ;;  %v3646_v6 = vmax.f32 %v2908_v55, 0.0  ;;  %v979_v47 = vld [vmem:[#allocation10 + $0x158] sm:$0xff] }
  0xfc   : > { %v1110_v36 = vshll.u32 %v2218_v12, %v3644_v48  ;;  %v943_v44 = vadd.f32 %v942_v33, %v3006_v31  ;;  %v2219_v35 = vmov 1326507024   ;;  %vm1114_vm2 = vcmp.lt.s32.totalorder %v3645_v21, 2  ;;  %v888_v31 = vld [vmem:[#allocation10 + $0x90] sm:$0xff]  ;;  %v889_v33 = vld [vmem:[#allocation10 + $0x98] sm:$0xff] }
  0xfd   : > { %v1010_v62 = vmul.f32 %v978_v11, %v3646_v6  ;;  %v1111_v46 = vshrl.u32 %v2219_v35, %v3643_v39  ;;  %v1037_v23 = vadd.f32 %v1036_v53, %v1006_v5  ;;  %v1109_v38 = vor.u32 %v1108_v50, %v1107_v63 }
  0xfe   : > { %vm1115_vm3 = vcmp.lt.s32.totalorder %v3645_v21, 3  ;;  %vm1116_vm4 = vcmp.lt.s32.totalorder %v3645_v21, 4  ;;  %v944_v20 = vadd.f32 %v943_v44, %v3014_v10  ;;  %v1121_v55 = vsel %vm1113_vm1, %v1100_v7, %v1103_v30 }
  0xff   : > { %v1112_v48 = vor.u32 %v1111_v46, %v1110_v36  ;;  %v1118_v52 = vsel %vm1116_vm4, %v1106_v4, 2102212464  ;;  %v1038_v56 = vadd.f32 %v1037_v23, %v1007_v49  ;;  %v1117_v39 = vsel %vm1113_vm1, %v1097_v59, %v1100_v7  ;;  %v3647_v7 = vld [vmem:[#allocation23_spill] sm:$0xff]  ;;  %v891_v46 = vld [vmem:[#allocation10 + $0xa8] sm:$0xff]  ;;  %v892_v23 = vld [vmem:[#allocation10 + $0xb0] sm:$0xff] }
 0x100   : > { %v1122_v37 = vsel %vm1116_vm4, %v1109_v38, 920167782  ;;  %v1125_v5 = vsel %vm1113_vm1, %v1103_v30, %v1106_v4  ;;  %v945_v45 = vadd.f32 %v944_v20, %v3018_v8  ;;  %v1119_v10 = vsel %vm1115_vm3, %v1103_v30, %v1118_v52  ;;  %v890_v8 = vld [vmem:[#allocation10 + $0xa0] sm:$0xff] }
 0x101   : > { %v1123_v11 = vsel %vm1115_vm3, %v1106_v4, %v1122_v37  ;;  %v1126_v1 = vsel %vm1116_vm4, %v1112_v48, 1326507024  ;;  %v1039_v61 = vadd.f32 %v1038_v56, %v3054_v26  ;;  %v3648_v63 = vor.u32 8388608, %v3647_v7  ;;  %v980_v26 = vld [vmem:[#allocation10 + $0x160] sm:$0xff] }
 0x102   : > { %v1124_v49 = vsel %vm1114_vm2, %v1121_v55, %v1123_v11  ;;  %v1127_v59 = vsel %vm1115_vm3, %v1109_v38, %v1126_v1  ;;  %v3649_v50 = vmax.f32 %v2924_v17, 0.0  ;;  %v3650_v30 = vmax.f32 %v2926_v19, 0.0  ;;  %v981_v38 = vld [vmem:[#allocation10 + $0x168] sm:$0xff] }
 0x103   : > { %v1129_v53 = vshll.u32 %v3648_v63, 8  ;;  %v946_v4 = vadd.f32 %v945_v45, %v3022_v41  ;;  %v1128_v6 = vsel %vm1114_vm2, %v1125_v5, %v1127_v59  ;;  %v3651_v20 = vmax.f32 %v2910_v29, 0.0  ;;  %v893_v5 = vld [vmem:[#allocation10 + $0xb8] sm:$0xff]  ;;  %v894_v45 = vld [vmem:[#allocation10 + $0xc0] sm:$0xff] }
 0x104   : > { %v920_v36 = vmul.f32 %v888_v31, %v3649_v50  ;;  %v3124_v44 = vmul.f32 %v889_v33, %v3650_v30  ;;  %v1040_v52 = vadd.f32 %v1039_v61, %v3060_v13  ;;  %v1120_v41 = vsel %vm1114_vm2, %v1117_v39, %v1119_v10  ;;  %v3654_v61 = vld [vmem:[#allocation22_spill] sm:$0xff]  ;;  %v982_v50 = vld [vmem:[#allocation10 + $0x170] sm:$0xff] }
 0x105   : > { %v1011_v48 = vmul.f32 %v979_v47, %v3651_v20  ;;  %v3132_v55 = vmul.u32.u64.low %v1129_v53, %v1128_v6  ;;  %v3133_v31 = vmul.u32.u64.high %v1129_v53, %v1128_v6, %v3132_v55  ;;  %v947_v33 = vadd.f32 %v946_v4, %v3026_v42  ;;  %v895_v42 = vld [vmem:[#allocation10 + $0xc8] sm:$0xff]  ;;  %v896_v30 = vld [vmem:[#allocation10 + $0xd0] sm:$0xff] }
 0x106   : > { %v3138_v56 = vmul.u32.u64.low %v1129_v53, %v1124_v49  ;;  %v3139_v37 = vmul.u32.u64.high %v1129_v53, %v1124_v49, %v3138_v56  ;;  %v3652_v11 = vmax.f32 %v2928_v14, 0.0  ;;  %v3653_v47 = vmax.f32 %v2912_v51, 0.0  ;;  %v898_v55 = vld [vmem:[#allocation10 + $0xe0] sm:$0xff] }
 0x107   : > { %v1041_v1 = vadd.f32 %v1040_v52, %v1010_v62  ;;  %v3655_v59 = vand.u32 2139095040, %v3654_v61  ;;  %v3656_v21 = vmax.f32 %v2930_v18, 0.0  ;;  %v3657_v10 = vmax.f32 %v2932_v0, 0.0  ;;  %v897_v62 = vld [vmem:[#allocation10 + $0xd8] sm:$0xff] }
 0x108   : > { %v922_v29 = vmul.f32 %v890_v8, %v3652_v11  ;;  %v1012_v13 = vmul.f32 %v980_v26, %v3653_v47  ;;  %v948_v63 = vadd.f32 %v947_v33, %v3030_v28  ;;  %v3658_v8 = vmax.f32 %v2914_v2, 0.0  ;;  %v983_v2 = vld [vmem:[#allocation10 + $0x178] sm:$0xff] }
 0x109   : > { %v1189_v7 = vshrl.u32 %v3655_v59, 23  ;;  %v3150_v39 = vmul.f32 %v891_v46, %v3656_v21  ;;  %v3154_v49 = vmul.f32 %v892_v23, %v3657_v10  ;;  %v1042_v4 = vadd.f32 %v1041_v1, %v1011_v48  ;;  %v899_v48 = vld [vmem:[#allocation10 + $0xe8] sm:$0xff] }
 0x10a   : > { %v1013_v51 = vmul.f32 %v981_v38, %v3658_v8  ;;  %v1136_v26 = vmul.u32 %v1129_v53, %v1120_v41  ;;  %vm1138_vm5 = vc.u32 %v3133_v31, %v3138_v56  ;;  %v3659_v46 = vmax.f32 %v2934_v32, 0.0  ;;  %v985_v21 = vld [vmem:[#allocation10 + $0x188] sm:$0xff] }
 0x10b   : > { %v1759_v6 = vadd.s32 4294967169, %v1189_v7  ;;  %v3660_v23 = vmax.f32 %v2936_v3, 0.0  ;;  %v949_v28 = vadd.f32 %v948_v63, %v3034_v15  ;;  %v1139_v38 = vadd.s32 1, %v3139_v37  ;;  %v984_v7 = vld [vmem:[#allocation10 + $0x180] sm:$0xff] }
 0x10c   : > { %v3163_v20 = vmul.f32 %v893_v5, %v3659_v46  ;;  %v3661_v53 = vmax.f32 %v2938_v25, 0.0  ;;  %v3662_v41 = vmax.f32 %v2916_v16, 0.0  ;;  %v1043_v5 = vadd.f32 %v1042_v4, %v1012_v13  ;;  %v900_v16 = vld [vmem:[#allocation10 + $0xf0] sm:$0xff]  ;;  %v987_v46 = vld [vmem:[#allocation10 + $0x198] sm:$0xff] }
 0x10d   : > { %v3167_v52 = vmul.f32 %v894_v45, %v3660_v23  ;;  %v1195_v47 = vadd.s32 1, %v1759_v6  ;;  %v3663_v1 = vmax.f32 %v2942_v43, 0.0  ;;  %v3664_v15 = vmax.f32 %v2944_v57, 0.0  ;;  %v986_v6 = vld [vmem:[#allocation10 + $0x190] sm:$0xff]  ;;  %v988_v23 = vld [vmem:[#allocation10 + $0x1a0] sm:$0xff] }
 0x10e   : > { %v3173_v33 = vmul.f32 %v895_v42, %v3661_v53  ;;  %v1014_v11 = vmul.f32 %v982_v50, %v3662_v41  ;;  %v950_v59 = vadd.f32 %v949_v28, %v3040_v34  ;;  %v1140_v42 = vsel %vm1138_vm5, %v1139_v38, %v3139_v37  ;;  %v989_v28 = vld [vmem:[#allocation10 + $0x1a8] sm:$0xff] }
 0x10f   : > { %v3179_v45 = vmul.f32 %v896_v30, %v3663_v1  ;;  %v3183_v61 = vmul.f32 %v897_v62, %v3664_v15  ;;  %v3665_v13 = vmax.f32 %v2918_v27, 0.0  ;;  %v1044_v63 = vadd.f32 %v1043_v5, %v1013_v51  ;;  %v3669_v53 = vld [vmem:[#allocation28_spill] sm:$0xff]  ;;  %v991_v1 = vld [vmem:[#allocation10 + $0x1b8] sm:$0xff] }
 0x110   : > { %v1141_v50 = vadd.s32 %v1140_v42, %v1136_v26  ;;  %vm1196_vm6 = vcmp.gt.s32.totalorder %v1195_v47, 0  ;;  %v3666_v8 = vmax.f32 %v2946_v58, 0.0  ;;  %v3667_v34 = vmax.f32 %v2948_v60, 0.0 }
 0x111   : > { %v1015_v10 = vmul.f32 %v983_v2, %v3665_v13  ;;  %v951_v4 = vadd.f32 %v950_v59, %v920_v36  ;;  %v1197_v37 = vsel %vm1196_vm6, %v1195_v47, 0  ;;  %v3668_v27 = vmax.f32 %v2920_v9, 0.0  ;;  %v3671_v36 = vld [vmem:[#allocation27_spill] sm:$0xff] }
 0x112   : > { %v3194_v30 = vmul.f32 %v898_v55, %v3666_v8  ;;  %v3198_v62 = vmul.f32 %v899_v48, %v3667_v34  ;;  %v1045_v51 = vadd.f32 %v1044_v63, %v1014_v11  ;;  %v1142_v26 = vadd.s32 536870912, %v1141_v50  ;;  %v990_v48 = vld [vmem:[#allocation10 + $0x1b0] sm:$0xff] }
 0x113   : > { %v1016_v2 = vmul.f32 %v984_v7, %v3668_v27  ;;  %v1199_v38 = vand.u32 31, %v1197_v37  ;;  %v3670_v41 = vmax.f32 %v3669_v53, 0.0  ;;  %v952_v5 = vadd.f32 %v951_v4, %v3124_v44 }
 0x114   : > { %v3672_v15 = vmax.f32 %v3671_v36, 0.0  ;;  %v1185_v47 = vand.u32 2147483647, %v3071_v54  ;;  %v3673_v42 = vmax.f32 %v2924_v17, 0.0  ;;  %v3674_v11 = vmax.f32 %v2926_v19, 0.0 }
 0x115   : > { %v3204_v55 = vmul.f32 %v900_v16, %v3670_v41  ;;  %v1046_v13 = vadd.f32 %v1045_v51, %v1015_v10  ;;  %v1200_v63 = vsub.s32 32, %v1199_v38  ;;  %v953_v8 = vadd.f32 %v952_v5, %v922_v29 }
 0x116   : > { %v1017_v59 = vmul.f32 %v985_v21, %v3672_v15  ;;  %v1018_v9 = vmul.f32 %v986_v6, %v3673_v42  ;;  %v1019_v7 = vmul.f32 %v987_v46, %v3674_v11  ;;  %v3675_v16 = vmax.f32 %v2928_v14, 0.0  ;;  %v992_v46 = vld [vmem:[#allocation10 + $0x1c0] sm:$0xff] }
 0x117   : > { %v3676_v44 = vmax.f32 %v2930_v18, 0.0  ;;  %v3218_v27 = vshrl.u32 %v1142_v26, 30  ;;  %v3677_v21 = vmax.f32 %v2932_v0, 0.0  ;;  %v3678_v17 = vmax.f32 %v2934_v32, 0.0 }
 0x118   : > { %v1020_v34 = vmul.f32 %v988_v23, %v3675_v16  ;;  %v1047_v36 = vadd.f32 %v1046_v13, %v1016_v2  ;;  %v3226_v19 = vadd.f32 %v3071_v54, %v3068_v40  ;;  %v954_v29 = vadd.f32 %v953_v8, %v3150_v39 }
 0x119   : > { %v1021_v4 = vmul.f32 %v989_v28, %v3676_v44  ;;  %v1022_v41 = vmul.f32 %v990_v48, %v3677_v21  ;;  %v1023_v6 = vmul.f32 %v991_v1, %v3678_v17  ;;  %v1192_v14 = vand.u32 8388607, %v1185_v47 }
 0x11a   : > { %v3231_v18 = vshrl.u32 %v1197_v37, 5  ;;  %v1202_v10 = vshll.u32 %v2214_v22, %v1199_v38  ;;  %v1048_v0 = vadd.f32 %v1047_v36, %v1017_v59  ;;  %v3679_v23 = vmov 2475754826  }
 0x11b   : > { %v1203_v28 = vshrl.u32 %v3679_v23, %v1200_v63  ;;  %v1205_v32 = vshll.u32 %v3679_v23, %v1199_v38  ;;  %v3680_v2 = vmov 2131351028   ;;  %v955_v26 = vadd.f32 %v954_v29, %v3154_v49 }
 0x11c   : > { %v1206_v51 = vshrl.u32 %v3680_v2, %v1200_v63  ;;  %v1144_v5 = vshll.u32 %v3218_v27, 30  ;;  %v1211_v39 = vshll.u32 %v2217_v24, %v1199_v38  ;;  %v1212_v48 = vshrl.u32 %v2218_v12, %v1200_v63 }
 0x11d   : > { %v1049_v37 = vadd.f32 %v1048_v0, %v1018_v9  ;;  %v1208_v1 = vshll.u32 %v3680_v2, %v1199_v38  ;;  %v1209_v15 = vshrl.u32 %v2217_v24, %v1200_v63  ;;  %v1396_v59 = vand.u32 2139095040, %v3226_v19 }
 0x11e   : > { %v956_v42 = vadd.f32 %v955_v26, %v3163_v20  ;;  %v3681_v11 = vmax.f32 %v2936_v3, 0.0  ;;  %v1214_v49 = vshll.u32 %v2218_v12, %v1199_v38  ;;  %v1215_v8 = vshrl.u32 %v2219_v35, %v1200_v63 }
 0x11f   : > { %v1050_v16 = vadd.f32 %v1049_v37, %v1019_v7  ;;  %v1193_v44 = vor.u32 8388608, %v1192_v14  ;;  %v1204_v21 = vor.u32 %v1203_v28, %v1202_v10  ;;  %v1207_v17 = vor.u32 %v1206_v51, %v1205_v32  ;;  %v994_v14 = vld [vmem:[#allocation10 + $0x1d0] sm:$0xff]  ;;  %v901_v37 = vld [vmem:[#allocation10 + $0xf8] sm:$0xff] }
 0x120   : > { %v1024_v13 = vmul.f32 %v992_v46, %v3681_v11  ;;  %v957_v9 = vadd.f32 %v956_v42, %v3167_v52  ;;  %v3250_v36 = vsub.s32 %v1141_v50, %v1144_v5  ;;  %v1213_v29 = vor.u32 %v1212_v48, %v1211_v39 }
 0x121   : > { %vm1217_vm7 = vcmp.lt.s32.totalorder %v3231_v18, 1  ;;  %v1051_v0 = vadd.f32 %v1050_v16, %v1020_v34  ;;  %v1201_v20 = vshrl.u32 %v2214_v22, %v1200_v63  ;;  %v1210_v3 = vor.u32 %v1209_v15, %v1208_v1  ;;  %v993_v34 = vld [vmem:[#allocation10 + $0x1c8] sm:$0xff] }
 0x122   : > { %v1397_v46 = vshrl.u32 %v1396_v59, 23  ;;  %v958_v38 = vadd.f32 %v957_v9, %v3173_v33  ;;  %v1216_v26 = vor.u32 %v1215_v8, %v1214_v49  ;;  %vm1219_vm8 = vcmp.lt.s32.totalorder %v3231_v18, 3  ;;  %v995_v8 = vld [vmem:[#allocation10 + $0x1d8] sm:$0xff] }
 0x123   : > { %vm1220_vm9 = vcmp.lt.s32.totalorder %v3231_v18, 4  ;;  %v1052_v7 = vadd.f32 %v1051_v0, %v1021_v4  ;;  %vm1218_vm10 = vcmp.lt.s32.totalorder %v3231_v18, 2  ;;  %v1225_v50 = vsel %vm1217_vm7, %v1204_v21, %v1207_v17 }
 0x124   : > { %v1222_v52 = vsel %vm1220_vm9, %v1210_v3, 2102212464  ;;  %v959_v63 = vadd.f32 %v958_v38, %v3179_v45  ;;  %v1147_v33 = vsub.s32 0, %v3250_v36  ;;  %v1226_v10 = vsel %vm1220_vm9, %v1213_v29, 920167782 }
 0x125   : > { %v1233_v28 = vshll.u32 %v1193_v44, 8  ;;  %v1053_v32 = vadd.f32 %v1052_v7, %v1022_v41  ;;  %v1221_v4 = vsel %vm1217_vm7, %v1201_v20, %v1204_v21  ;;  %v1223_v51 = vsel %vm1219_vm8, %v1207_v17, %v1222_v52 }
 0x126   : > { %v1227_v5 = vsel %vm1219_vm8, %v1210_v3, %v1226_v10  ;;  %v960_v45 = vadd.f32 %v959_v63, %v3183_v61  ;;  %v1229_v48 = vsel %vm1217_vm7, %v1207_v17, %v1210_v3  ;;  %v1230_v41 = vsel %vm1220_vm9, %v1216_v26, 1326507024  ;;  %v996_v3 = vld [vmem:[#allocation10 + $0x1e0] sm:$0xff] }
 0x127   : > { %v1228_v39 = vsel %vm1218_vm10, %v1225_v50, %v1227_v5  ;;  %v3682_v1 = vmax.f32 %v2938_v25, 0.0  ;;  %v3683_v59 = vmax.f32 %v2942_v43, 0.0  ;;  %v1054_v11 = vadd.f32 %v1053_v32, %v1023_v6  ;;  %v3684_v6 = vld [vmem:[#allocation30_spill] sm:$0xff]  ;;  %v997_v50 = vld [vmem:[#allocation10 + $0x1e8] sm:$0xff] }
 0x128   : > { %v1767_v49 = vadd.s32 4294967169, %v1397_v46  ;;  %v961_v61 = vadd.f32 %v960_v45, %v3194_v30  ;;  %v1231_v16 = vsel %vm1219_vm8, %v1213_v29, %v1230_v41  ;;  %v1756_v9 = vmin.u32 %v1147_v33, %v3250_v36 }
 0x129   : > { %v1025_v15 = vmul.f32 %v993_v34, %v3682_v1  ;;  %v1026_v42 = vmul.f32 %v994_v14, %v3683_v59  ;;  %v3286_v44 = vmul.u32.u64.low %v1233_v28, %v1228_v39  ;;  %v3287_v21 = vmul.u32.u64.high %v1233_v28, %v1228_v39, %v3286_v44  ;;  %v965_v34 = vld [vmem:[#allocation12] sm:$0xff] }
 0x12a   : > { %v1055_v17 = vadd.f32 %v1054_v11, %v1024_v13  ;;  %v1224_v25 = vsel %vm1218_vm10, %v1221_v4, %v1223_v51  ;;  %v1232_v43 = vsel %vm1218_vm10, %v1229_v48, %v1231_v16  ;;  %v3685_v0 = vmax.f32 %v3684_v6, 0.0  ;;  %v998_v4 = vld [vmem:[#allocation10 + $0x1f0] sm:$0xff] }
 0x12b   : > { %v962_v20 = vadd.f32 %v961_v61, %v3198_v62  ;;  %v3298_v29 = vmul.u32.u64.low %v1233_v28, %v1232_v43  ;;  %v3299_v46 = vmul.u32.u64.high %v1233_v28, %v1232_v43, %v3298_v29  ;;  %v3686_v38 = vmax.f32 %v2944_v57, 0.0 }
 0x12c   : > { %v933_v30 = vmul.f32 %v901_v37, %v3685_v0  ;;  %v1056_v26 = vadd.f32 %v1055_v17, %v1025_v15  ;;  %v1403_v7 = vadd.s32 1, %v1767_v49  ;;  %v1240_v63 = vmul.u32 %v1233_v28, %v1224_v25 }
 0x12d   : > { %v1027_v13 = vmul.f32 %v995_v8, %v3686_v38  ;;  %v963_v52 = vadd.f32 %v962_v20, %v3204_v55  ;;  %v1243_v18 = vadd.s32 1, %v3287_v21  ;;  %v3687_v14 = vmax.f32 %v2946_v58, 0.0  ;;  %v999_v58 = vld [vmem:[#allocation10 + $0x1f8] sm:$0xff] }
 0x12e   : > { %v1057_v62 = vadd.f32 %v1056_v26, %v1026_v42  ;;  %v1149_v10 = vclz %v1756_v9  ;;  %vm1404_vm11 = vcmp.gt.s32.totalorder %v1403_v7, 0  ;;  %vm1242_vm12 = vc.u32 %v3299_v46, %v3286_v44  ;;  %v1064_v9 = vld [vmem:[#allocation12 + $0x8] sm:$0xff] }
 0x12f   : > { %v1028_v33 = vmul.f32 %v996_v3, %v3687_v14  ;;  %v964_v32 = vadd.f32 %v963_v52, %v933_v30  ;;  %v1405_v57 = vsel %vm1404_vm11, %v1403_v7, 0  ;;  %v3688_v55 = vmax.f32 %v2948_v60, 0.0 }
 0x130   : > { %v1058_v28 = vadd.f32 %v1057_v62, %v1027_v13  ;;  %v1244_v5 = vsel %vm1242_vm12, %v1243_v18, %v3287_v21  ;;  %v1393_v48 = vand.u32 2147483647, %v3226_v19  ;;  %v1407_v41 = vand.u32 31, %v1405_v57 }
 0x131   : > { %v1029_v51 = vmul.f32 %v997_v50, %v3688_v55  ;;  %v3312_v45 = vadd.f32 %v965_v34, %v964_v32  ;;  %v1245_v39 = vadd.s32 %v1244_v5, %v1240_v63  ;;  %v3689_v37 = vmax.f32 %v3669_v53, 0.0 }
 0x132   : > { %v1059_v15 = vadd.f32 %v1058_v28, %v1028_v33  ;;  %v1757_v59 = vadd.s32 4294967294, %v1149_v10  ;;  %v1408_v60 = vsub.s32 32, %v1407_v41  ;;  %v3690_v11 = vmov %v3685_v0 }
 0x133   : > { %v1030_v1 = vmul.f32 %v998_v4, %v3689_v37  ;;  %1569 = vst [vmem:[%s2445_s20] sm:$0xff] %v3312_v45  ;;  %v1246_v42 = vadd.s32 536870912, %v1245_v39  ;;  %v1031_v49 = vmul.f32 %v999_v58, %v3690_v11  ;;  %v1400_v16 = vand.u32 8388607, %v1393_v48 }
 0x134   : > { %v1060_v61 = vadd.f32 %v1059_v15, %v1029_v51  ;;  %vm1758_vm13 = vcmp.lt.s32.totalorder %v1757_v59, 0  ;;  %v1406_v17 = vshrl.u32 %v1405_v57, 5  ;;  %v1410_v53 = vshll.u32 %v2214_v22, %v1407_v41 }
 0x135   : > { %v3321_v8 = vshrl.u32 %v1246_v42, 30  ;;  %v1411_v43 = vshrl.u32 %v3679_v23, %v1408_v60  ;;  %v1413_v0 = vshll.u32 %v3679_v23, %v1407_v41  ;;  %v1414_v6 = vshrl.u32 %v3680_v2, %v1408_v60 }
 0x136   : > { %v1061_v21 = vadd.f32 %v1060_v61, %v1030_v1  ;;  %v1416_v20 = vshll.u32 %v3680_v2, %v1407_v41  ;;  %v1417_v3 = vshrl.u32 %v2217_v24, %v1408_v60  ;;  %v1419_v29 = vshll.u32 %v2217_v24, %v1407_v41 }
 0x137   : > { %v1248_v25 = vshll.u32 %v3321_v8, 30  ;;  %v1401_v13 = vor.u32 8388608, %v1400_v16  ;;  %v1420_v26 = vshrl.u32 %v2218_v12, %v1408_v60  ;;  %v1152_v52 = vsel %vm1758_vm13, 0, %v1757_v59 }
 0x138   : > { %v1062_v30 = vadd.f32 %v1061_v21, %v1031_v49  ;;  %v1422_v23 = vshll.u32 %v2218_v12, %v1407_v41  ;;  %v1423_v50 = vshrl.u32 %v2219_v35, %v1408_v60  ;;  %v1409_v18 = vshrl.u32 %v2214_v22, %v1408_v60 }
 0x139   : > { %v1249_v38 = vsub.s32 %v1245_v39, %v1248_v25  ;;  %v1412_v2 = vor.u32 %v1411_v43, %v1410_v53  ;;  %v1415_v34 = vor.u32 %v1414_v6, %v1413_v0  ;;  %v1418_v24 = vor.u32 %v1417_v3, %v1416_v20 }
 0x13a   : > { %v3334_v7 = vadd.f32 %v1064_v9, %v1062_v30  ;;  %v1421_v14 = vor.u32 %v1420_v26, %v1419_v29  ;;  %v1424_v33 = vor.u32 %v1423_v50, %v1422_v23  ;;  %vm1425_vm14 = vcmp.lt.s32.totalorder %v1406_v17, 1 }
 0x13b   : > { %v1251_v63 = vsub.s32 0, %v1249_v38  ;;  %v1157_v62 = vsub.s32 4294967266, %v1152_v52  ;;  %vm1428_vm15 = vcmp.lt.s32.totalorder %v1406_v17, 4  ;;  %v1137_v32 = vadd.s32 %v3138_v56, %v3133_v31 }
 0x13c   : > { %1774 = vst [vmem:[%s2445_s20 + $0x8] sm:$0xff] %v3334_v7  ;;  %vm1427_vm0 = vcmp.lt.s32.totalorder %v1406_v17, 3  ;;  %v1430_v12 = vsel %vm1428_vm15, %v1418_v24, 2102212464  ;;  %v1441_v35 = vshll.u32 %v1401_v13, 8  ;;  %vm1426_vm1 = vcmp.lt.s32.totalorder %v1406_v17, 2 }
 0x13d   : > { %v1760_v10 = vmin.u32 %v1251_v63, %v1249_v38  ;;  %v1429_v22 = vsel %vm1425_vm14, %v1409_v18, %v1412_v2  ;;  %v1433_v57 = vsel %vm1425_vm14, %v1412_v2, %v1415_v34  ;;  %v1431_v55 = vsel %vm1427_vm0, %v1415_v34, %v1430_v12 }
 0x13e   : > { %v1434_v51 = vsel %vm1428_vm15, %v1421_v14, 920167782  ;;  %v1437_v28 = vsel %vm1425_vm14, %v1415_v34, %v1418_v24  ;;  %v1438_v5 = vsel %vm1428_vm15, %v1424_v33, 1326507024  ;;  %v1153_v58 = vsub.s32 32, %v1152_v52 }
 0x13f   : > { %v1253_v4 = vclz %v1760_v10  ;;  %v1158_v39 = vadd.s32 127, %v1157_v62  ;;  %v1435_v37 = vsel %vm1427_vm0, %v1418_v24, %v1434_v51  ;;  %v1241_v31 = vadd.s32 %v3286_v44, %v3299_v46 }
 0x140   : > { %v1432_v56 = vsel %vm1426_vm1, %v1429_v22, %v1431_v55  ;;  %v1436_v1 = vsel %vm1426_vm1, %v1433_v57, %v1435_v37  ;;  %v1439_v15 = vsel %vm1427_vm0, %v1421_v14, %v1438_v5  ;;  %v1154_v44 = vshll.u32 %v3250_v36, %v1152_v52  ;;  %v3693_v57 = vld [vmem:[#allocation21_spill] sm:$0xff] }
 0x141   : > { %v1761_v41 = vadd.s32 4294967294, %v1253_v4  ;;  %v1440_v59 = vsel %vm1426_vm1, %v1437_v28, %v1439_v15  ;;  %v3352_v42 = vmul.u32.u64.low %v1441_v35, %v1436_v1  ;;  %v3353_v60 = vmul.u32.u64.high %v1441_v35, %v1436_v1, %v3352_v42 }
 0x142   : > { %v3355_v49 = vmul.u32.u64.low %v1441_v35, %v1440_v59  ;;  %v3356_v61 = vmul.u32.u64.high %v1441_v35, %v1440_v59, %v3355_v49  ;;  %v1155_v46 = vshrl.u32 %v1137_v32, %v1153_v58  ;;  %v1159_v9 = vshll.u32 %v1158_v39, 23 }
 0x143   : > { %vm1762_vm2 = vcmp.lt.s32.totalorder %v1761_v41, 0  ;;  %v1448_v25 = vmul.u32 %v1441_v35, %v1432_v56  ;;  %v1451_v17 = vadd.s32 1, %v3353_v60  ;;  %vm1187_vm4 = vcmp.lt.s32.totalorder %v3071_v54, 0  ;;  %v3393_v49 = vld [vmem:[#allocation3 + $0x8] sm:$0xff] }
 0x144   : > { %v1256_v11 = vsel %vm1762_vm2, 0, %v1761_v41  ;;  %vm1450_vm3 = vc.u32 %v3356_v61, %v3352_v42  ;;  %v1156_v3 = vor.u32 %v1155_v46, %v1154_v44  ;;  %v1160_v29 = vor.u32 4788187, %v1159_v9 }
 0x145   : > { %v1257_v16 = vsub.s32 32, %v1256_v11  ;;  %v1258_v21 = vshll.u32 %v1249_v38, %v1256_v11  ;;  %v1261_v53 = vsub.s32 4294967266, %v1256_v11  ;;  %v1452_v20 = vsel %vm1450_vm3, %v1451_v17, %v3353_v60 }
 0x146   : > { %v1453_v13 = vadd.s32 %v1452_v20, %v1448_v25  ;;  %v1161_v52 = vand.u32 2147483647, %v1160_v29  ;;  %v1163_v50 = vcvt.s32.f32 %v1156_v3  ;;  %vm3368_vm5 = vcmp.le.f32.partialorder %v1185_v47, 0.7853982 }
 0x147   : > { %v1259_v43 = vshrl.u32 %v1241_v31, %v1257_v16  ;;  %v1262_v0 = vadd.s32 127, %v1261_v53  ;;  %v1271_v10 = vsub.s32 4, %v3321_v8  ;;  %vm1083_vm6 = vcmp.lt.s32.totalorder %v3068_v40, 0 }
 0x148   : > { %v1454_v23 = vadd.s32 536870912, %v1453_v13  ;;  %v1164_v14 = vmul.f32 %v1163_v50, %v1161_v52  ;;  %v3694_v55 = vand.u32 2147483647, %v3693_v57  ;;  %v1449_v39 = vadd.s32 %v3352_v42, %v3356_v61 }
 0x149   : > { %v1260_v6 = vor.u32 %v1259_v43, %v1258_v21  ;;  %v1263_v30 = vshll.u32 %v1262_v0, 23  ;;  %v1272_v47 = vsel %vm1187_vm4, %v1271_v10, %v3321_v8  ;;  %v1167_v60 = vsub.s32 4, %v3218_v27 }
 0x14a   : > { %v3362_v63 = vshrl.u32 %v1454_v23, 30  ;;  %v1165_v35 = vxor.u32 2147483648, %v1164_v14  ;;  %vm3380_vm7 = vcmp.le.f32.partialorder %v3694_v55, 0.7853982  ;;  %v1274_v58 = vsel %vm3368_vm5, 0, %v1272_v47  ;;  %v1074_v47 = vld [vmem:[#allocation3 + $0x18] sm:$0xff] }
 0x14b   : > { %v1264_v38 = vor.u32 4788187, %v1263_v30  ;;  %v1267_v26 = vcvt.s32.f32 %v1260_v6  ;;  %v1382_v37 = vand.u32 3, %v1274_v58  ;;  %v1168_v9 = vsel %vm1083_vm6, %v1167_v60, %v3218_v27  ;;  %v1072_v30 = vld [vmem:[#allocation3] sm:$0xff]  ;;  %v3425_v55 = vld [vmem:[#allocation2 + $0x8] sm:$0xff] }
 0x14c   : > { %v1456_v2 = vshll.u32 %v3362_v63, 30  ;;  %v1166_v28 = vsel %vm1083_vm6, %v1165_v35, %v1164_v14  ;;  %vm1277_vm12 = vweird.f32 %v3071_v54  ;;  %v1497_v43 = vmul.f32 2.0, %v3393_v49 }
 0x14d   : > { %v1265_v36 = vand.u32 2147483647, %v1264_v38  ;;  %v1169_v8 = vsel %vm3380_vm7, %v3068_v40, %v1166_v28  ;;  %vm1387_vm9 = vcmp.eq.s32.totalorder %v1382_v37, 2  ;;  %vm1384_vm10 = vcmp.eq.s32.totalorder %v1382_v37, 0 }
 0x14e   : > { %v1457_v33 = vsub.s32 %v1453_v13, %v1456_v2  ;;  %vm1383_vm11 = vcmp.lt.s32.totalorder %v1382_v37, 2  ;;  %v1170_v20 = vsel %vm3380_vm7, 0, %v1168_v9  ;;  %vm1395_vm13 = vcmp.lt.s32.totalorder %v3226_v19, 0 }
 0x14f   : > { %v1268_v18 = vmul.f32 %v1267_v26, %v1265_v36  ;;  %v1479_v27 = vsub.s32 4, %v3362_v63  ;;  %v1278_v38 = vadd.s32 3, %v1274_v58  ;;  %vm3408_vm14 = vcmp.le.f32.partialorder %v1393_v48, 0.7853982 }
 0x150   : > { %v1459_v12 = vsub.s32 0, %v1457_v33  ;;  %v1174_v36 = vadd.s32 3, %v1170_v20  ;;  %v1507_v28 = vmul.f32 0.5, %v3393_v49  ;;  %v1510_v58 = vmul.f32 -0.5, %v3393_v49 }
 0x151   : > { %v1269_v24 = vxor.u32 2147483648, %v1268_v18  ;;  %v1279_v48 = vand.u32 3, %v1278_v38  ;;  %vm1485_vm6 = vweird.f32 %v3226_v19 }
 0x152   : > { %v1768_v4 = vmin.u32 %v1459_v12, %v1457_v33  ;;  %v1175_v14 = vand.u32 3, %v1174_v36 }
 0x153   : > { %v1270_v62 = vsel %vm1187_vm4, %v1269_v24, %v1268_v18  ;;  %v1480_v18 = vsel %vm1395_vm13, %v1479_v27, %v3362_v63  ;;  %vm1281_vm15 = vcmp.eq.s32.totalorder %v1279_v48, 0  ;;  %vm1284_vm0 = vcmp.eq.s32.totalorder %v1279_v48, 2 }
 0x154   : > { %v1273_v32 = vsel %vm3368_vm5, %v3071_v54, %v1270_v62  ;;  %v1461_v22 = vclz %v1768_v4  ;;  %vm1177_vm1 = vcmp.eq.s32.totalorder %v1175_v14, 0  ;;  %vm1180_vm2 = vcmp.eq.s32.totalorder %v1175_v14, 2 }
 0x155   : > { %1929 = vcosq.f32 %v1273_v32  ;;  %vm1176_vm3 = vcmp.lt.s32.totalorder %v1175_v14, 2  ;;  %vm1280_vm4 = vcmp.lt.s32.totalorder %v1279_v48, 2  ;;  %vm1173_vm5 = vweird.f32 %v3068_v40 }
 0x156   : > { %1931 = vsinq.f32 %v1273_v32  ;;  %v1769_v5 = vadd.s32 4294967294, %v1461_v22  ;;  %v1502_v32 = vsub.f32 0.0, %v3393_v49 }
 0x157   : > { %1933 = vcosq.f32 %v1169_v8 }
 0x158   : > { %vm1770_vm8 = vcmp.lt.s32.totalorder %v1769_v5, 0  ;;  %1935 = vsinq.f32 %v1169_v8 }
 0x159   : > { %v1464_v41 = vsel %vm1770_vm8, 0, %v1769_v5  ;;  %1937 = vtanh.f32 %v3312_v45  ;;  %v1482_v45 = vsel %vm3408_vm14, 0, %v1480_v18 }
 0x15a   : > { %v1465_v31 = vsub.s32 32, %v1464_v41  ;;  %v1466_v56 = vshll.u32 %v1457_v33, %v1464_v41  ;;  %v1469_v1 = vsub.s32 4294967266, %v1464_v41  ;;  %1939 = vtanh.f32 %v3334_v7  ;;  %v3420_v33 = vld [vmem:[#allocation2 + $0x18] sm:$0xff] }
 0x15b   : > { %v1503_v7 = vmul.f32 2.0, %v3420_v33  ;;  %v1486_v10 = vadd.s32 3, %v1482_v45 }
 0x15c   : > { %v1467_v15 = vshrl.u32 %v1449_v39, %v1465_v31  ;;  %v1470_v59 = vadd.s32 127, %v1469_v1 }
 0x15d   : > { %v1504_v51 = vadd.f32 %v3425_v55, %v1503_v7  ;;  %v1487_v5 = vand.u32 3, %v1486_v10 }
 0x15e   : > { %v1468_v42 = vor.u32 %v1467_v15, %v1466_v56  ;;  %v1471_v61 = vshll.u32 %v1470_v59, 23  ;;  %v1518_v59 = vmul.f32 0.1, %v3425_v55 }
 0x15f   : > { %v1505_v1 = vmul.f32 %v1504_v51, %v1502_v32  ;;  %v1508_v15 = vmul.f32 %v1507_v28, %v1504_v51  ;;  %vm1492_vm7 = vcmp.eq.s32.totalorder %v1487_v5, 2  ;;  %vm1489_vm8 = vcmp.eq.s32.totalorder %v1487_v5, 0 }
 0x160   : > { %v1472_v44 = vor.u32 4788187, %v1471_v61  ;;  %v1475_v46 = vcvt.s32.f32 %v1468_v42 }
 0x162   : > { %v1930_v11 = vpop.eup %1929  ;;  %v1473_v17 = vand.u32 2147483647, %v1472_v44 }
 0x163   : > { %v1932_v16 = vpop.eup %1931  ;;  %v1285_v21 = vxor.u32 2147483648, %v1930_v11 }
 0x164   : > { %v1282_v53 = vxor.u32 2147483648, %v1932_v16  ;;  %v1476_v29 = vmul.f32 %v1475_v46, %v1473_v17  ;;  %v1934_v34 = vpop.eup %1933  ;;  %v1516_v17 = vmul.f32 0.1, %v3420_v33 }
 0x165   : > { %v1389_v25 = vsel %vm1387_vm9, %v1285_v21, %v1932_v16  ;;  %v1936_v24 = vpop.eup %1935  ;;  %v1181_v63 = vxor.u32 2147483648, %v1934_v34  ;;  %v1286_v35 = vsel %vm1284_vm0, %v1285_v21, %v1932_v16  ;;  %v1078_v21 = vld [vmem:[#allocation3 + $0x10] sm:$0xff]  ;;  %vm1488_vm9 = vcmp.lt.s32.totalorder %v1487_v5, 2 }
 0x166   : > { %v1386_v0 = vsel %vm1384_vm10, %v1930_v11, %v1282_v53  ;;  %v1477_v23 = vxor.u32 2147483648, %v1476_v29  ;;  %v1178_v62 = vxor.u32 2147483648, %v1936_v24  ;;  %v1283_v12 = vsel %vm1281_vm15, %v1930_v11, %v1282_v53  ;;  %v1938_v39 = vpop.eup %1937 }
 0x167   : > { %v1390_v6 = vsel %vm1383_vm11, %v1386_v0, %v1389_v25  ;;  %v1182_v57 = vsel %vm1180_vm2, %v1181_v63, %v1936_v24  ;;  %v1287_v8 = vsel %vm1280_vm4, %v1283_v12, %v1286_v35  ;;  %v1940_v41 = vpop.eup %1939 }
 0x168   : > { %v1391_v3 = vsel %vm1277_vm12, nan, %v1390_v6  ;;  %v1478_v50 = vsel %vm1395_vm13, %v1477_v23, %v1476_v29  ;;  %v1179_v22 = vsel %vm1177_vm1, %v1934_v34, %v1178_v62  ;;  %v1288_v11 = vsel %vm1277_vm12, nan, %v1287_v8  ;;  %v1080_v6 = vld [vmem:[#allocation3 + $0x20] sm:$0xff]  ;;  %v1772_v8 = vld [vmem:[%s2438_s29 + $0x10] sm:$0xff] }
 0x169   : > { %v1498_v13 = vmul.f32 %v1497_v43, %v1391_v3  ;;  %v1481_v2 = vsel %vm3408_vm14, %v3226_v19, %v1478_v50  ;;  %v1500_v4 = vmul.f32 %v1391_v3, %v3393_v49  ;;  %v1183_v37 = vsel %vm1176_vm3, %v1179_v22, %v1182_v57  ;;  %v1773_v57 = vld [vmem:[%s2438_s29 + $0x18] sm:$0xff] }
 0x16a   : > { %v1511_v49 = vmul.f32 %v3420_v33, %v1510_v58  ;;  %v1070_v16 = vmul.f32 2.0, %v1940_v41  ;;  %v1184_v53 = vsel %vm1173_vm5, nan, %v1183_v37  ;;  %v1067_v43 = vmul.f32 4.0, %v1938_v39 }
 0x16b   : > { %v1499_v52 = vadd.f32 %v1498_v13, %v1072_v30  ;;  %v1501_v31 = vadd.f32 %v1500_v4, %v1074_v47  ;;  %v1509_v54 = vmul.f32 %v1508_v15, %v1288_v11  ;;  %v1513_v20 = vmul.f32 %v1184_v53, %v1078_v21 }
 0x16c   : > { %v1506_v27 = vmul.f32 %v1505_v1, %v1288_v11  ;;  %v1512_v13 = vmul.f32 %v1511_v49, %v1288_v11  ;;  %v1519_v40 = vsub.f32 %v1070_v16, %v1518_v59  ;;  %v1517_v36 = vsub.f32 %v1067_v43, %v1516_v17 }
 0x16d   : > { %1941 = vrcp.f32 %v1499_v52  ;;  %v1527_v25 = vmul.f32 %v1501_v31, %v1501_v31 }
 0x16e   : > { %1943 = vcosq.f32 %v1481_v2  ;;  %v1537_v48 = vmul.f32 %v3425_v55, %v1512_v13 }
 0x16f   : > { %1945 = vsinq.f32 %v1481_v2  ;;  %v1525_v2 = vmul.f32 %v3425_v55, %v1506_v27 }
 0x17a   : > { %v1942_v56 = vpop.eup %1941 }
 0x17b   : > { %v1944_v60 = vpop.eup %1943  ;;  %v1521_v42 = vmul.f32 %v1942_v56, %v1499_v52  ;;  %v1535_v52 = vmul.f32 %v3420_v33, %v1509_v54 }
 0x17c   : > { %v1946_v61 = vpop.eup %1945  ;;  %v1493_v44 = vxor.u32 2147483648, %v1944_v60 }
 0x17d   : > { %v1490_v46 = vxor.u32 2147483648, %v1946_v61  ;;  %v1522_v9 = vsub.f32 2.0, %v1521_v42 }
 0x17e   : > { %v1494_v0 = vsel %vm1492_vm7, %v1493_v44, %v1946_v61 }
 0x17f   : > { %v1491_v30 = vsel %vm1489_vm8, %v1944_v60, %v1490_v46  ;;  %v1523_v3 = vmul.f32 %v1942_v56, %v1522_v9 }
 0x180   : > { %v1495_v29 = vsel %vm1488_vm9, %v1491_v30, %v1494_v0 }
 0x181   : > { %v1496_v38 = vsel %vm1485_vm6, nan, %v1495_v29  ;;  %v1528_v26 = vmul.f32 %v1527_v25, %v1523_v3  ;;  %v1539_v45 = vmul.f32 %v1523_v3, %v1501_v31 }
 0x182   : > { %v1514_v23 = vmul.f32 %v1496_v38, %v1080_v6 }
 0x183   : > { %v1529_v50 = vsub.f32 %v1074_v47, %v1528_v26 }
 0x184   : > { %v1515_v18 = vadd.f32 %v1514_v23, %v1513_v20  ;;  %v1534_v34 = vadd.f32 %v1519_v40, %v1514_v23 }
 0x185   : > { %1947 = vrcp.f32 %v1529_v50 }
 0x186   : > { %v1524_v24 = vadd.f32 %v1517_v36, %v1515_v18  ;;  %v1536_v14 = vsub.f32 %v1534_v34, %v1535_v52 }
 0x188   : > { %v1526_v7 = vsub.f32 %v1524_v24, %v1525_v2  ;;  %v1538_v19 = vsub.f32 %v1536_v14, %v1537_v48 }
 0x18a   : > { %v1540_v62 = vmul.f32 %v1539_v45, %v1526_v7 }
 0x18c   : > { %v1541_v63 = vsub.f32 %v1538_v19, %v1540_v62 }
 0x192   : > { %v1948_v10 = vpop.eup %1947 }
 0x193   : > { %v1531_v32 = vmul.f32 %v1948_v10, %v1529_v50 }
 0x195   : > { %v1532_v12 = vsub.f32 2.0, %v1531_v32 }
 0x197   : > { %v1533_v35 = vmul.f32 %v1948_v10, %v1532_v12 }
 0x199   : > { %v1542_v4 = vmul.f32 %v1541_v63, %v1533_v35 }
 0x19b   : > { %v1543_v47 = vmul.f32 %v1542_v4, %v1501_v31  ;;  %v1560_v22 = vmul.f32 0.05, %v1542_v4 }
 0x19d   : > { %v1544_v51 = vsub.f32 %v1526_v7, %v1543_v47  ;;  %v1561_v28 = vadd.f32 %v3425_v55, %v1560_v22 }
 0x19f   : > { %v1545_v5 = vmul.f32 %v1544_v51, %v1523_v3  ;;  %v1564_v58 = vadd.f32 %v1773_v57, %v1561_v28 }
 0x1a1   : > { %v1555_v39 = vmul.f32 0.05, %v1545_v5  ;;  %1778 = vst [vmem:[%s2445_s20 + $0x28] sm:$0xff] %v1564_v58  ;;  %1568 = vst [vmem:[#allocation2 + $0x8] sm:$0xff] %v1564_v58 }
 0x1a3   : > { %v1556_v41 = vadd.f32 %v3420_v33, %v1555_v39 }
 0x1a5   : > { %v1559_v55 = vadd.f32 %v1772_v8, %v1556_v41 }
 0x1a7   : > { %1777 = vst [vmem:[%s2445_s20 + $0x20] sm:$0xff] %v1559_v55  ;;  %1567 = vst [vmem:[#allocation2 + $0x18] sm:$0xff] %v1559_v55 }
 0x1a8   : > { %2124 = shalt.err (!%p2121_p12)
}
 0x1a9   : > { %s2125_s9 = scalar_lea.hbm %s3455_s27, 768  ;;  %s2129_s2 = scalar_lea.hbm %s3511_s6, 6144 }
 0x1aa   : > { %p2126_p13 = scmp.ne.s32.totalorder %s3455_s27, %s2125_s9  ;;  %p2130_p7 = scmp.lt.s32.totalorder %s3455_s27, %s3511_s6 }
 0x1ab   : > { %p2131_p8 = scmp.lt.s32.totalorder %s2129_s2, %s2125_s9 }
 0x1ac   : > { %p2127_p0 = pnand %p2126_p13, %p3699_p2 }
 0x1ad   : > { %p2132_p1 = por %p2131_p8, %p2130_p7 }
 0x1ae   : > { %p2128_p4 = pneg %p2127_p0 }
 0x1b0   : > { %p2133_p3 = pnand %p2132_p1, %p2128_p4 }
 0x1b2   : > { %2136 = shalt.err (!%p2133_p3)
}
 0x1b3   : > { %s2221_s20 = smov 128   ;;  %s2222_s28 = smov 8  }
 0x1b4   : > { %1819 = dma.vmem_to_hbm [thread:$0]  (%p3699_p2), %s3457_s14, 768, %s3455_s27, %s1581_s24, %s2221_s20, %s2221_s20, %s2222_s28  }
 0x1b5 PF: > { %p1856_p5 = scmp.ge.s32.totalorder %s2203_s26, 2  ;;  %s1611_s7 = sand.u32 1, %s2183_s21  }
 0x1b6   : > { %p3700_p9 = scmp.ne.s32.totalorder %s3557_s12, 0  ;;  %s1612_s8 = scalar_lea.sflag [#allocation6], %s1611_s7 }
 0x1b8   : > { %p1842_p10 = pnand %p1856_p5, %p3700_p9 }
 0x1ba   : > { %p1843_p11 = pneg %p1842_p10 }
 0x1bc   : > { %2178 = dma.done.wait (%p1843_p11), %s1612_s8, 768  }
 0x1bd   : > { %2180 = vsyncadd (%p1843_p11), %s1612_s8, 4294966528  ;;  %s25_s26 = sadd.s32 1, %s2203_s26   ;;  %s3701_s21 = smov %s2187_s22 }
 0x1be   : > { %p22_p6 = scmp.ge.s32.totalorder %s25_s26, 10   ;;  %s3702_s22 = smov %s2191_s23 }
 0x1bf   : > { %s3703_s23 = smov %s2395_s19  ;;  %s3704_s24 = smov %s2199_s25 }
 0x1c0   : > { %s3705_s25 = smov %s3707_s13  ;;  %24 = sbr.rel (!%p22_p6) target bundleno = 13 (0xd), region = 139 }
 0x1c5   :  { %1617 = vsyncpa [#allocation5], 1 }
 0x1c6   :  { %1619 = vsyncpa [#allocation5 + $0x1], 1 }
 0x1c7   :  { %1620 = vsyncpa [#allocation8], 1 }
 0x1c8   :  { %1621 = vsyncpa [#allocation11], 1 }
 0x1c9   :  { %1622 = vsyncpa [#allocation14], 1 }
 0x1ca   :  { %1624 = vsyncpa [#allocation14 + $0x1], 1 }
 0x1cb   :  { %1625 = vsyncpa [#allocation6], 1 }
 0x1cc   :  { %1627 = vsyncpa [#allocation6 + $0x1], 1 }

</bundles_post_ra>
